<compile_context>
chip_gen: v7x
topology: tpu7x:2x2x1
jax: 0.10.0
libtpu: 0.0.40
codegen_flags: <defaults>
</compile_context>

<pallas_src>
import functools

import jax
import jax.numpy as jnp
import numpy as np
from jax.experimental import pallas as pl
from jax.experimental.pallas import tpu as pltpu


# -----------------------------------------------------------------------------
# Host-side (numpy) interpolation-matrix construction, PyTorch-exact bilinear
# source-index math.  Built once per configuration and cached.
# -----------------------------------------------------------------------------
def _interp_matrix_np(in_size: int, out_size: int, align_corners: bool) -> np.ndarray:
    if align_corners:
        if out_size == 1:
            src = np.zeros((out_size,), np.float64)
        else:
            src = np.arange(out_size, dtype=np.float64) * (
                (in_size - 1) / (out_size - 1)
            )
    else:
        scale = in_size / out_size
        src = (np.arange(out_size, dtype=np.float64) + 0.5) * scale - 0.5
        src = np.maximum(src, 0.0)  # PyTorch clamps negative source idx
    i0 = np.clip(np.floor(src).astype(np.int64), 0, in_size - 1)
    i1 = np.minimum(i0 + 1, in_size - 1)
    frac = (src - i0).astype(np.float32)
    w = np.zeros((out_size, in_size), np.float32)
    rows = np.arange(out_size)
    np.add.at(w, (rows, i0), 1.0 - frac)
    np.add.at(w, (rows, i1), frac)
    return w


@functools.lru_cache(maxsize=None)
def _kron_weight_t(h, w, h_out, w_out, align_corners):
    """kron(Wh, Ww)^T as an (H*W, Hout*Wout) f32 device constant (cached)."""
    wh = _interp_matrix_np(h, h_out, align_corners)      # (Hout, H)
    ww = _interp_matrix_np(w, w_out, align_corners)      # (Wout, W)
    # Keep f32 weights for bit-level agreement with PyTorch f32 math.
    return jnp.asarray(np.kron(wh.T, ww.T))              # (H*W, Hout*Wout)


@functools.lru_cache(maxsize=None)
def _separable_weights_t(h, w, h_out, w_out, align_corners):
    wh = _interp_matrix_np(h, h_out, align_corners)
    ww = _interp_matrix_np(w, w_out, align_corners)
    return (jnp.asarray(np.ascontiguousarray(ww.T)),     # (W, Wout)
            jnp.asarray(np.ascontiguousarray(wh.T)))     # (H, Hout)


# -----------------------------------------------------------------------------
# Budgets / block selection.
# -----------------------------------------------------------------------------
_KRON_WEIGHT_BYTES_MAX = 4 << 20   # fused kron path only when kron(Wh,Ww) small
_FUSED_TOTAL_BYTES_MAX = 8 << 20   # single no-grid call when all data fits this
_BLOCK_BUDGET_BYTES = 4 << 20      # per-grid-step live-block budget (fallbacks)


def _choose_block_rows(nc: int, row_bytes: int) -> int:
    """Rows (flattened N*C) per grid step for the per-tensor fallback paths."""
    if nc * row_bytes <= _BLOCK_BUDGET_BYTES:
        # Single grid step: no per-step grid/DMA overhead, and a full-dim block
        # bypasses the 8-row sublane-alignment rule.
        return nc
    cap = max(8, (_BLOCK_BUDGET_BYTES // max(row_bytes, 1)) // 8 * 8)
    if cap >= 256:
        cap = (cap // 256) * 256   # MXU-tile-friendly blocks for big NC
    return min(nc, cap)


# -----------------------------------------------------------------------------
# Kernel 1: fused Kronecker matmul  out = x @ kron(Wh, Ww)^T.
# -----------------------------------------------------------------------------
def _kron_kernel(x_ref, kt_ref, o_ref):
    o_ref[...] = jnp.dot(
        x_ref[...], kt_ref[...], preferred_element_type=jnp.float32
    ).astype(o_ref.dtype)


def _kron_resize_single(x2d, kt, dtype):
    """Per-tensor kron resize with optional row-block grid splitting."""
    nc, cols_in = x2d.shape
    cols_out = kt.shape[1]
    row_bytes = cols_in * x2d.dtype.itemsize + cols_out * dtype.itemsize
    tb = _choose_block_rows(nc, row_bytes)
    if tb >= nc:
        # Single invocation, no grid: whole operands live in VMEM once.
        return pl.pallas_call(
            _kron_kernel, out_shape=jax.ShapeDtypeStruct((nc, cols_out), dtype)
        )(x2d, kt)
    grid = (pl.cdiv(nc, tb),)
    return pl.pallas_call(
        _kron_kernel,
        out_shape=jax.ShapeDtypeStruct((nc, cols_out), dtype),
        grid_spec=pltpu.PrefetchScalarGridSpec(
            num_scalar_prefetch=0,
            grid=grid,
            in_specs=[
                pl.BlockSpec((tb, cols_in), lambda i: (i, 0)),
                pl.BlockSpec((cols_in, cols_out), lambda i: (0, 0)),
            ],
            out_specs=pl.BlockSpec((tb, cols_out), lambda i: (i, 0)),
        ),
        compiler_params=pltpu.CompilerParams(dimension_semantics=("parallel",)),
    )(x2d, kt)


# -----------------------------------------------------------------------------
# Kernel 2 (fallback for large spatial sizes): separable resize.
#   cols matmul -> transpose -> rows matmul (no weight broadcast, no upcast).
# -----------------------------------------------------------------------------
def _separable_kernel(x_ref, wwt_ref, wht_ref, o_ref):
    x = x_ref[...]                                      # (TB, H, W), native dtype
    tb, h, w = x.shape
    w_out = wwt_ref.shape[1]
    h_out = wht_ref.shape[1]
    # Column interpolation: one lane-dense matmul.
    t = jnp.dot(
        x.reshape(tb * h, w), wwt_ref[...], preferred_element_type=jnp.float32
    ).reshape(tb, h, w_out)
    # Row interpolation: transpose then one lane-dense matmul against Wh^T.
    tt = jnp.transpose(t, (0, 2, 1)).reshape(tb * w_out, h)
    out = jnp.dot(tt, wht_ref[...], preferred_element_type=jnp.float32)
    out = jnp.transpose(out.reshape(tb, w_out, h_out), (0, 2, 1))
    o_ref[...] = out.astype(o_ref.dtype)


def _separable_resize(x_flat, out_hw, align_corners):
    nc, h, w = x_flat.shape
    h_out, w_out = out_hw
    dtype = x_flat.dtype
    wwt, wht = _separable_weights_t(h, w, h_out, w_out, align_corners)
    row_bytes = (h * w * x_flat.dtype.itemsize
                 + (h * w_out + w_out * h_out + h_out * w_out) * 4)
    tb = _choose_block_rows(nc, row_bytes)
    grid = (pl.cdiv(nc, tb),)
    return pl.pallas_call(
        _separable_kernel,
        out_shape=jax.ShapeDtypeStruct((nc, h_out, w_out), dtype),
        grid_spec=pltpu.PrefetchScalarGridSpec(
            num_scalar_prefetch=0,
            grid=grid,
            in_specs=[
                pl.BlockSpec((tb, h, w), lambda i: (i, 0, 0)),
                pl.BlockSpec((w, w_out), lambda i: (0, 0)),
                pl.BlockSpec((h, h_out), lambda i: (0, 0)),
            ],
            out_specs=pl.BlockSpec((tb, h_out, w_out), lambda i: (i, 0, 0)),
        ),
        compiler_params=pltpu.CompilerParams(dimension_semantics=("parallel",)),
    )(x_flat, wwt, wht)


# -----------------------------------------------------------------------------
# Fused multi-tensor path: resize all tensors in ONE no-grid pallas_call.
# -----------------------------------------------------------------------------
def _fused_kron_resize(tensors, out_hw, align_corners):
    h_out, w_out = out_hw
    cols_out = h_out * w_out

    xs2d, kt_idx, kt_list, key_to_idx = [], [], [], {}
    for t in tensors:
        n_, c_, h, w = t.shape
        xs2d.append(t.reshape(n_ * c_, h * w))
        key = (h, w)
        if key not in key_to_idx:
            key_to_idx[key] = len(kt_list)
            kt_list.append(_kron_weight_t(h, w, h_out, w_out, align_corners))
        kt_idx.append(key_to_idx[key])

    n_x, n_k = len(xs2d), len(kt_list)

    def kernel(*refs):
        x_refs = refs[:n_x]
        kt_refs = refs[n_x:n_x + n_k]
        o_refs = refs[n_x + n_k:]
        for i in range(n_x):
            o_refs[i][...] = jnp.dot(
                x_refs[i][...],
                kt_refs[kt_idx[i]][...],
                preferred_element_type=jnp.float32,
            ).astype(o_refs[i].dtype)

    out_shape = tuple(
        jax.ShapeDtypeStruct((x.shape[0], cols_out), t.dtype)
        for x, t in zip(xs2d, tensors)
    )
    ys = pl.pallas_call(kernel, out_shape=out_shape)(*xs2d, *kt_list)
    return tuple(
        y.reshape(t.shape[0], t.shape[1], h_out, w_out)
        for y, t in zip(ys, tensors)
    )


# -----------------------------------------------------------------------------
# Module equivalent.
# -----------------------------------------------------------------------------
class InterpolateThreeOut:
    """JAX/Pallas equivalent of Interpolate_3out (mode='bilinear').

    `scale_factor` is passed positionally to F.interpolate in the reference,
    so PyTorch binds it to `size` (target output spatial size).
    """

    def __init__(self, scale_factor, mode, align_corners):
        self.size = scale_factor
        if mode != "bilinear":
            # TODO(synk): only bilinear interpolation is implemented.
            raise NotImplementedError("only mode='bilinear' is implemented")
        self.align_corners = bool(align_corners)

    def __call__(self, i):
        i1, i2, i3 = i
        size = self.size
        out_hw = (size, size) if isinstance(size, int) else tuple(size)
        h_out, w_out = out_hw
        cols_out = h_out * w_out
        tensors = [i1, i2, i3]
        align = self.align_corners

        # Decide whether everything can go through one fused no-grid call.
        fused_ok = True
        total_bytes = 0
        kt_seen = {}
        for t in tensors:
            h, w = t.shape[-2], t.shape[-1]
            kron_bytes = h * w * cols_out * 4
            if kron_bytes > _KRON_WEIGHT_BYTES_MAX:
                fused_ok = False
                break
            kt_seen[(h, w)] = kron_bytes
            nrows = t.shape[0] * t.shape[1]
            total_bytes += nrows * (h * w + cols_out) * t.dtype.itemsize
        if fused_ok:
            total_bytes += sum(kt_seen.values())
            fused_ok = total_bytes <= _FUSED_TOTAL_BYTES_MAX

        if fused_ok:
            return _fused_kron_resize(tensors, out_hw, align)

        # Per-tensor fallback: large NC (block-split kron) or large spatial
        # sizes (separable kernel).
        outs = []
        for t in tensors:
            n_, c_, h, w = t.shape
            if h * w * cols_out * 4 <= _KRON_WEIGHT_BYTES_MAX:
                kt = _kron_weight_t(h, w, h_out, w_out, align)
                y = _kron_resize_single(t.reshape(n_ * c_, h * w), kt, t.dtype)
            else:
                y = _separable_resize(t.reshape(n_ * c_, h, w), out_hw, align)
            outs.append(y.reshape(n_, c_, h_out, w_out))
        return tuple(outs)


# -----------------------------------------------------------------------------
# Pure-JAX reference (dense einsum with the same host-built matrices).
# -----------------------------------------------------------------------------
def _bilinear_resize_ref(x, out_hw, align_corners):
    h, w = x.shape[-2:]
    wh = jnp.asarray(_interp_matrix_np(h, out_hw[0], align_corners))
    ww = jnp.asarray(_interp_matrix_np(w, out_hw[1], align_corners))
    return jnp.einsum(
        "ph,nchw,qw->ncpq", wh, x.astype(jnp.float32), ww
    ).astype(x.dtype)


if __name__ == "__main__":
    key = jax.random.PRNGKey(0)
    k1, k2, k3 = jax.random.split(key, 3)

    # Small NCHW inputs (three feature maps, as the module expects a 3-tuple).
    i1 = jax.random.normal(k1, (2, 4, 16, 16), dtype=jnp.float32)
    i2 = jax.random.normal(k2, (2, 8, 16, 16), dtype=jnp.float32)
    i3 = jax.random.normal(k3, (2, 4, 8, 8), dtype=jnp.float32)

    # Module config: target size 32, bilinear, align_corners=True.
    mod = InterpolateThreeOut(scale_factor=32, mode="bilinear", align_corners=True)

    o1, o2, o3 = mod((i1, i2, i3))
    jax.block_until_ready((o1, o2, o3))

    assert o1.shape == (2, 4, 32, 32)
    assert o2.shape == (2, 8, 32, 32)
    assert o3.shape == (2, 4, 32, 32)

    # Correctness check against the dense-einsum reference (fused kron path).
    for inp, out in ((i1, o1), (i2, o2), (i3, o3)):
        ref = _bilinear_resize_ref(inp, (32, 32), True)
        if not jnp.allclose(out, ref, atol=1e-5, rtol=1e-5):
            raise AssertionError("Pallas (fused) output mismatch vs reference")

    # Also exercise the separable fallback (used for very large spatial sizes)
    # so both code paths stay validated.
    sep = _separable_resize(i1.reshape(-1, 16, 16), (32, 32), True)
    sep = sep.reshape(2, 4, 32, 32)
    jax.block_until_ready(sep)
    ref1 = _bilinear_resize_ref(i1, (32, 32), True)
    if not jnp.allclose(sep, ref1, atol=1e-5, rtol=1e-5):
        raise AssertionError("Pallas (separable) output mismatch vs reference")

    print("KERNEL_OK")
</pallas_src>

<mosaic_0001>
module attributes {stable_mosaic.version = 11 : i64} {
  func.func @kernel(%arg0: memref<8x256xf32, #tpu.memory_space<vmem>>, %arg1: memref<16x256xf32, #tpu.memory_space<vmem>>, %arg2: memref<8x64xf32, #tpu.memory_space<vmem>>, %arg3: memref<256x1024xf32, #tpu.memory_space<vmem>>, %arg4: memref<64x1024xf32, #tpu.memory_space<vmem>>, %arg5: memref<8x1024xf32, #tpu.memory_space<vmem>>, %arg6: memref<16x1024xf32, #tpu.memory_space<vmem>>, %arg7: memref<8x1024xf32, #tpu.memory_space<vmem>>) attributes {dimension_semantics = [], scalar_prefetch = 0 : i64, scratch_operands = 0 : i64, tpu.core_type = #tpu.core_type<tc>} {
    %c0 = arith.constant 0 : index
    %c0_0 = arith.constant 0 : index
    %0 = vector.load %arg0[%c0, %c0_0] : memref<8x256xf32, #tpu.memory_space<vmem>>, vector<8x256xf32>
    %c0_1 = arith.constant 0 : index
    %c0_2 = arith.constant 0 : index
    %1 = vector.load %arg3[%c0_1, %c0_2] : memref<256x1024xf32, #tpu.memory_space<vmem>>, vector<256x1024xf32>
    %cst = arith.constant dense<0.000000e+00> : vector<8x1024xf32>
    %2 = tpu.matmul %0, %1, %cst {dimension_numbers = #tpu.dot_dimension_numbers<[1], [0], [0], [1], [0, 0, 1, 1], [], []>} : vector<8x256xf32>, vector<256x1024xf32>, vector<8x1024xf32> -> vector<8x1024xf32>
    %c0_3 = arith.constant 0 : index
    %c0_4 = arith.constant 0 : index
    %3 = vector.load %arg5[%c0_3, %c0_4] : memref<8x1024xf32, #tpu.memory_space<vmem>>, vector<8x1024xf32>
    tpu.vector_store %arg5[%c0_3, %c0_4], %2 {strides = array<i32>} : memref<8x1024xf32, #tpu.memory_space<vmem>>, vector<8x1024xf32>,
    %c0_5 = arith.constant 0 : index
    %c0_6 = arith.constant 0 : index
    %4 = vector.load %arg1[%c0_5, %c0_6] : memref<16x256xf32, #tpu.memory_space<vmem>>, vector<16x256xf32>
    %c0_7 = arith.constant 0 : index
    %c0_8 = arith.constant 0 : index
    %5 = vector.load %arg3[%c0_7, %c0_8] : memref<256x1024xf32, #tpu.memory_space<vmem>>, vector<256x1024xf32>
    %cst_9 = arith.constant dense<0.000000e+00> : vector<16x1024xf32>
    %6 = tpu.matmul %4, %5, %cst_9 {dimension_numbers = #tpu.dot_dimension_numbers<[1], [0], [0], [1], [0, 0, 1, 1], [], []>} : vector<16x256xf32>, vector<256x1024xf32>, vector<16x1024xf32> -> vector<16x1024xf32>
    %c0_10 = arith.constant 0 : index
    %c0_11 = arith.constant 0 : index
    %7 = vector.load %arg6[%c0_10, %c0_11] : memref<16x1024xf32, #tpu.memory_space<vmem>>, vector<16x1024xf32>
    tpu.vector_store %arg6[%c0_10, %c0_11], %6 {strides = array<i32>} : memref<16x1024xf32, #tpu.memory_space<vmem>>, vector<16x1024xf32>,
    %c0_12 = arith.constant 0 : index
    %c0_13 = arith.constant 0 : index
    %8 = vector.load %arg2[%c0_12, %c0_13] : memref<8x64xf32, #tpu.memory_space<vmem>>, vector<8x64xf32>
    %c0_14 = arith.constant 0 : index
    %c0_15 = arith.constant 0 : index
    %9 = vector.load %arg4[%c0_14, %c0_15] : memref<64x1024xf32, #tpu.memory_space<vmem>>, vector<64x1024xf32>
    %cst_16 = arith.constant dense<0.000000e+00> : vector<8x1024xf32>
    %10 = tpu.matmul %8, %9, %cst_16 {dimension_numbers = #tpu.dot_dimension_numbers<[1], [0], [0], [1], [0, 0, 1, 1], [], []>} : vector<8x64xf32>, vector<64x1024xf32>, vector<8x1024xf32> -> vector<8x1024xf32>
    %c0_17 = arith.constant 0 : index
    %c0_18 = arith.constant 0 : index
    %11 = vector.load %arg7[%c0_17, %c0_18] : memref<8x1024xf32, #tpu.memory_space<vmem>>, vector<8x1024xf32>
    tpu.vector_store %arg7[%c0_17, %c0_18], %10 {strides = array<i32>} : memref<8x1024xf32, #tpu.memory_space<vmem>>, vector<8x1024xf32>,
    return
  }
}

</mosaic_0001>

<bundles_post_ra>
// kernel: tpu_custom_call.1
= control target key start
LH: loop header
LB: loop body
LE: loop exit
PB: predicated region body
PF: predicated region fallthrough
CT: control target
= control target key end

     0   :  { %13 = vsyncpa [#allocation3], 0  ;;  %s2617_s0 = inlined_call_operand.hbm [shape: f32[8,256], index: 0, kind: input, shape index: {}]   ;;  %s2618_s1 = inlined_call_operand.hbm [shape: f32[16,256], index: 1, kind: input, shape index: {}]   ;;  %s2619_s2 = inlined_call_operand.hbm [shape: f32[8,64], index: 2, kind: input, shape index: {}]   ;;  %s2620_s3 = inlined_call_operand.hbm [shape: f32[256,1024], index: 3, kind: input, shape index: {}]   ;;  %s2621_s4 = inlined_call_operand.hbm [shape: f32[64,1024], index: 4, kind: input, shape index: {}]   ;;  %s2622_s5 = inlined_call_operand.hbm [shape: f32[8,1024], index: 5, kind: output, shape index: {0}]   ;;  %s2623_s6 = inlined_call_operand.hbm [shape: f32[16,1024], index: 6, kind: output, shape index: {1}]   ;;  %s2624_s7 = inlined_call_operand.hbm [shape: f32[8,1024], index: 7, kind: output, shape index: {2}]  }
   0x1   :  { %14 = vsyncpa [#allocation6], 0 }
   0x2   :  { %15 = vsyncpa [#allocation9], 0 }
   0x3   :  { %16 = vsyncpa [#allocation4], 0 }
   0x4   :  { %17 = vsyncpa [#allocation13], 0  ;;  %s2409_s24 = smov [#allocation5]   ;;  %s2223_s28 = scalar_lea.hbm %s2618_s1, 512 }
   0x5   :  { %s33_s25 = sshll.u32 %s2409_s24, 4  ;;  %p2224_p0 = scmp.ne.s32.totalorder %s2618_s1, %s2223_s28  ;;  %s34_s25 = int_to_ptr.vmem [resolvable:$true] %s33_s25 }
   0x6   :  { %p2227_p1 = scmp.lt.u32.totalorder %s2223_s28, %s2618_s1 }
   0x8   :  { %p2229_p2 = pnand %p2227_p1, %p2224_p0 }
   0xa   :  { %2232 = shalt.err (!%p2229_p2)
}
   0xb   :  { %s2233_s10 = scalar_lea.vmem %s34_s25, 512  ;;  %p2238_p4 = scmp.lt.s32.totalorder %s34_s25, %s34_s25 }
   0xc   :  { %p2234_p3 = scmp.ne.s32.totalorder %s34_s25, %s2233_s10  ;;  %p2239_p5 = scmp.lt.s32.totalorder %s2233_s10, %s2233_s10 }
   0xe   :  { %p2240_p6 = por %p2239_p5, %p2238_p4 }
  0x10   :  { %p2241_p7 = pnand %p2240_p6, %p2234_p3 }
  0x12   :  { %2244 = shalt.err (!%p2241_p7)
}
  0x13   :  { %s2410_s11 = smov 256   ;;  %s2411_s12 = smov 16  }
  0x14   :  { %39 = dma.hbm_to_vmem [thread:$0]  %s2618_s1, 512, %s34_s25, [#allocation6], %s2410_s11, %s2410_s11, %s2411_s12  }
  0x15   :  { %s2412_s15 = smov [#allocation8]   ;;  %s2245_s19 = scalar_lea.hbm %s2620_s3, 32768 }
  0x16   :  { %s55_s16 = sshll.u32 %s2412_s15, 4  ;;  %p2246_p8 = scmp.ne.s32.totalorder %s2620_s3, %s2245_s19  ;;  %s56_s16 = int_to_ptr.vmem [resolvable:$true] %s55_s16 }
  0x17   :  { %p2249_p9 = scmp.lt.u32.totalorder %s2245_s19, %s2620_s3 }
  0x19   :  { %p2251_p10 = pnand %p2249_p9, %p2246_p8 }
  0x1b   :  { %2254 = shalt.err (!%p2251_p10)
}
  0x1c   :  { %s2255_s24 = scalar_lea.vmem %s56_s16, 32768  ;;  %p2260_p12 = scmp.lt.s32.totalorder %s56_s16, %s56_s16 }
  0x1d   :  { %p2256_p11 = scmp.ne.s32.totalorder %s56_s16, %s2255_s24  ;;  %p2261_p13 = scmp.lt.s32.totalorder %s2255_s24, %s2255_s24 }
  0x1f   :  { %p2262_p0 = por %p2261_p13, %p2260_p12 }
  0x21   :  { %p2263_p1 = pnand %p2262_p0, %p2256_p11 }
  0x23   :  { %2266 = shalt.err (!%p2263_p1)
}
  0x24   :  { %s2413_s1 = smov 1024   ;;  %s2414_s25 = smov 64  }
  0x25   :  { %61 = dma.hbm_to_vmem [thread:$0]  %s2620_s3, 32768, %s56_s16, [#allocation9], %s2413_s1, %s2413_s1, %s2414_s25  }
  0x26   :  { %s2415_s28 = smov [#allocation2]   ;;  %s2416_s30 = smov [#allocation7]  }
  0x27   :  { %s24_s29 = sshll.u32 %s2415_s28, 4  ;;  %s46_s8 = sshll.u32 %s2416_s30, 4  ;;  %s25_s29 = int_to_ptr.vmem [resolvable:$true] %s24_s29  ;;  %s47_s8 = int_to_ptr.vmem [resolvable:$true] %s46_s8 }
  0x28   :  { %s2267_s11 = scalar_lea.hbm %s2617_s0, 256 }
  0x29   :  { %p2268_p2 = scmp.ne.s32.totalorder %s2617_s0, %s2267_s11  ;;  %p2271_p3 = scmp.lt.u32.totalorder %s2267_s11, %s2617_s0 }
  0x2b   :  { %p2273_p4 = pnand %p2271_p3, %p2268_p2 }
  0x2d   :  { %2276 = shalt.err (!%p2273_p4)
}
  0x2e   :  { %s2277_s3 = scalar_lea.vmem %s25_s29, 256  ;;  %p2282_p6 = scmp.lt.s32.totalorder %s25_s29, %s25_s29 }
  0x2f   :  { %p2278_p5 = scmp.ne.s32.totalorder %s25_s29, %s2277_s3  ;;  %p2283_p7 = scmp.lt.s32.totalorder %s2277_s3, %s2277_s3 }
  0x31   :  { %p2284_p8 = por %p2283_p7, %p2282_p6 }
  0x33   :  { %p2285_p9 = pnand %p2284_p8, %p2278_p5 }
  0x35   :  { %2288 = shalt.err (!%p2285_p9)
}
  0x36   :  { %27 = dma.hbm_to_vmem [thread:$0]  %s2617_s0, 256, %s25_s29, [#allocation3]  }
  0x37   :  { %s2289_s20 = scalar_lea.hbm %s2619_s2, 128 }
  0x38   :  { %p2290_p10 = scmp.ne.s32.totalorder %s2619_s2, %s2289_s20  ;;  %p2293_p11 = scmp.lt.u32.totalorder %s2289_s20, %s2619_s2 }
  0x3a   :  { %p2295_p12 = pnand %p2293_p11, %p2290_p10 }
  0x3c   :  { %2298 = shalt.err (!%p2295_p12)
}
  0x3d   :  { %s2299_s26 = scalar_lea.vmem %s47_s8, 128  ;;  %p2304_p0 = scmp.lt.s32.totalorder %s47_s8, %s47_s8 }
  0x3e   :  { %p2300_p13 = scmp.ne.s32.totalorder %s47_s8, %s2299_s26  ;;  %p2305_p1 = scmp.lt.s32.totalorder %s2299_s26, %s2299_s26 }
  0x40   :  { %p2306_p2 = por %p2305_p1, %p2304_p0 }
  0x42   :  { %p2307_p3 = pnand %p2306_p2, %p2300_p13 }
  0x44   :  { %2310 = shalt.err (!%p2307_p3)
}
  0x45   :  { %49 = dma.hbm_to_vmem [thread:$0]  %s2619_s2, 128, %s47_s8, [#allocation6]  }
  0x46   :  { %s2417_s28 = smov [#allocation10]   ;;  %s2311_s10 = scalar_lea.hbm %s2621_s4, 8192 }
  0x47   :  { %s67_s29 = sshll.u32 %s2417_s28, 4  ;;  %p2312_p4 = scmp.ne.s32.totalorder %s2621_s4, %s2311_s10  ;;  %s68_s29 = int_to_ptr.vmem [resolvable:$true] %s67_s29 }
  0x48   :  { %p2315_p5 = scmp.lt.u32.totalorder %s2311_s10, %s2621_s4 }
  0x4a   :  { %p2317_p6 = pnand %p2315_p5, %p2312_p4 }
  0x4c   :  { %2320 = shalt.err (!%p2317_p6)
}
  0x4d   :  { %s2321_s15 = scalar_lea.vmem %s68_s29, 8192  ;;  %p2326_p8 = scmp.lt.s32.totalorder %s68_s29, %s68_s29 }
  0x4e   :  { %p2322_p7 = scmp.ne.s32.totalorder %s68_s29, %s2321_s15  ;;  %p2327_p9 = scmp.lt.s32.totalorder %s2321_s15, %s2321_s15 }
  0x50   :  { %p2328_p10 = por %p2327_p9, %p2326_p8 }
  0x52   :  { %p2329_p11 = pnand %p2328_p10, %p2322_p7 }
  0x54   :  { %2332 = shalt.err (!%p2329_p11)
}
  0x55   :  { %73 = dma.hbm_to_vmem [thread:$0]  %s2621_s4, 8192, %s68_s29, [#allocation9], %s2413_s1, %s2413_s1, %s2414_s25  }
  0x56   :  { %2399 = dma.done.wait [#allocation3], 256  }
  0x57   :  { %2400 = vsyncadd [#allocation3], 4294967040 }
  0x58   :  { %2401 = dma.done.wait [#allocation6], 640  }
  0x59   :  { %2402 = vsyncadd [#allocation6], 4294966656 }
  0x5a   :  { %2403 = dma.done.wait [#allocation9], 40960  }
  0x5b   :  { %2404 = vsyncadd [#allocation9], 4294926336  ;;  %v92_v0 = vld [vmem:[#allocation8 + $0x8] sm:$0xff]  ;;  %v94_v2 = vld [vmem:[#allocation8 + $0x18] sm:$0xff]  ;;  %vm1288_vm0 = vcmask 523264   ;;  %s2419_s4 = smov [#allocation11]  }
  0x5c   :  { %v100_v1 = vld [vmem:[#allocation8 + $0x48] sm:$0xff]  ;;  %v102_v4 = vld [vmem:[#allocation8 + $0x58] sm:$0xff]  ;;  %v91_v5 = vld [vmem:[#allocation8] sm:$0xff]  ;;  %s1590_s3 = sshll.u32 %s2419_s4, 4  ;;  %s1591_s3 = int_to_ptr.vmem [resolvable:$true] %s1590_s3 }
  0x5d   :  { %v1634_v3 = vpack.c.bf16 %v100_v1, %v92_v0  ;;  %v99_v6 = vld [vmem:[#allocation8 + $0x40] sm:$0xff]  ;;  %v1698_v7 = vpack.c.bf16 %v102_v4, %v94_v2  ;;  %v93_v9 = vld [vmem:[#allocation8 + $0x10] sm:$0xff]  ;;  %v108_v11 = vld [vmem:[#allocation8 + $0x88] sm:$0xff]  ;;  %s2333_s16 = scalar_lea.vmem %s1591_s3, 1024  ;;  %p2338_p13 = scmp.lt.s32.totalorder %s1591_s3, %s1591_s3 }
  0x5e   :  { %v1636_v8 = vpack.c.bf16 %v99_v6, %v91_v5  ;;  %v101_v10 = vld [vmem:[#allocation8 + $0x50] sm:$0xff]  ;;  %v116_v13 = vld [vmem:[#allocation8 + $0xc8] sm:$0xff]  ;;  %v110_v14 = vld [vmem:[#allocation8 + $0x98] sm:$0xff]  ;;  %p2334_p12 = scmp.ne.s32.totalorder %s1591_s3, %s2333_s16  ;;  %p2339_p0 = scmp.lt.s32.totalorder %s2333_s16, %s2333_s16 }
  0x5f   :  { %1635 = vmatprep.subr.bf16.mxu0 %v1634_v3  ;;  %v1700_v12 = vpack.c.bf16 %v101_v10, %v93_v9  ;;  %v118_v15 = vld [vmem:[#allocation8 + $0xd8] sm:$0xff]  ;;  %1699 = vmatprep.subr.bf16.mxu1 %v1698_v7  ;;  %v1638_v16 = vpack.c.bf16 %v116_v13, %v108_v11  ;;  %v107_v18 = vld [vmem:[#allocation8 + $0x80] sm:$0xff]  ;;  %v109_v20 = vld [vmem:[#allocation8 + $0x90] sm:$0xff] }
  0x60   :  { %1637 = vmatpush1.bf16.msra.mxu0 %v1636_v8  ;;  %v1702_v17 = vpack.c.bf16 %v118_v15, %v110_v14  ;;  %v115_v19 = vld [vmem:[#allocation8 + $0xc0] sm:$0xff]  ;;  %v117_v22 = vld [vmem:[#allocation8 + $0xd0] sm:$0xff]  ;;  %v124_v23 = vld [vmem:[#allocation8 + $0x108] sm:$0xff]  ;;  %p2340_p1 = por %p2339_p0, %p2338_p13 }
  0x61   :  { %1701 = vmatpush1.bf16.msra.mxu1 %v1700_v12  ;;  %v1640_v21 = vpack.c.bf16 %v115_v19, %v107_v18  ;;  %v132_v24 = vld [vmem:[#allocation8 + $0x148] sm:$0xff]  ;;  %1639 = vmatprep.subr.bf16.mxu0 %v1638_v16  ;;  %v1704_v25 = vpack.c.bf16 %v117_v22, %v109_v20  ;;  %v126_v27 = vld [vmem:[#allocation8 + $0x118] sm:$0xff]  ;;  %v123_v29 = vld [vmem:[#allocation8 + $0x100] sm:$0xff] }
  0x62   :  { %1703 = vmatprep.subr.bf16.mxu1 %v1702_v17  ;;  %v1642_v26 = vpack.c.bf16 %v132_v24, %v124_v23  ;;  %v134_v28 = vld [vmem:[#allocation8 + $0x158] sm:$0xff]  ;;  %v131_v31 = vld [vmem:[#allocation8 + $0x140] sm:$0xff]  ;;  %v125_v32 = vld [vmem:[#allocation8 + $0x110] sm:$0xff]  ;;  %p2341_p2 = pnand %p2340_p1, %p2334_p12 }
  0x63   :  { %v1706_v30 = vpack.c.bf16 %v134_v28, %v126_v27  ;;  %v133_v33 = vld [vmem:[#allocation8 + $0x150] sm:$0xff]  ;;  %v1644_v34 = vpack.c.bf16 %v131_v31, %v123_v29  ;;  %v140_v35 = vld [vmem:[#allocation8 + $0x188] sm:$0xff]  ;;  %v142_v37 = vld [vmem:[#allocation8 + $0x198] sm:$0xff] }
  0x64   :  { %1641 = vmatpush1.bf16.msra.mxu0 %v1640_v21  ;;  %v148_v36 = vld [vmem:[#allocation8 + $0x1c8] sm:$0xff]  ;;  %v1708_v38 = vpack.c.bf16 %v133_v33, %v125_v32  ;;  %v150_v40 = vld [vmem:[#allocation8 + $0x1d8] sm:$0xff]  ;;  %v139_v41 = vld [vmem:[#allocation8 + $0x180] sm:$0xff] }
  0x65   :  { %1705 = vmatpush1.bf16.msra.mxu1 %v1704_v25  ;;  %1643 = vmatprep.subr.bf16.mxu0 %v1642_v26  ;;  %v1646_v39 = vpack.c.bf16 %v148_v36, %v140_v35  ;;  %v147_v42 = vld [vmem:[#allocation8 + $0x1c0] sm:$0xff]  ;;  %v1710_v43 = vpack.c.bf16 %v150_v40, %v142_v37  ;;  %v141_v44 = vld [vmem:[#allocation8 + $0x190] sm:$0xff]  ;;  %v156_v46 = vld [vmem:[#allocation8 + $0x208] sm:$0xff] }
  0x66   :  { %1707 = vmatprep.subr.bf16.mxu1 %v1706_v30  ;;  %v149_v45 = vld [vmem:[#allocation8 + $0x1d0] sm:$0xff]  ;;  %v164_v47 = vld [vmem:[#allocation8 + $0x248] sm:$0xff]  ;;  %v158_v48 = vld [vmem:[#allocation8 + $0x218] sm:$0xff]  ;;  %v1648_v50 = vpack.c.bf16 %v147_v42, %v139_v41 }
  0x67   :  { %v166_v49 = vld [vmem:[#allocation8 + $0x258] sm:$0xff]  ;;  %v1712_v51 = vpack.c.bf16 %v149_v45, %v141_v44  ;;  %v1650_v52 = vpack.c.bf16 %v164_v47, %v156_v46  ;;  %v155_v53 = vld [vmem:[#allocation8 + $0x200] sm:$0xff]  ;;  %v157_v55 = vld [vmem:[#allocation8 + $0x210] sm:$0xff] }
  0x68   :  { %1645 = vmatpush1.bf16.msra.mxu0 %v1644_v34  ;;  %v163_v54 = vld [vmem:[#allocation8 + $0x240] sm:$0xff]  ;;  %v1714_v56 = vpack.c.bf16 %v166_v49, %v158_v48  ;;  %v165_v57 = vld [vmem:[#allocation8 + $0x250] sm:$0xff]  ;;  %v172_v58 = vld [vmem:[#allocation8 + $0x288] sm:$0xff] }
  0x69   :  { %1709 = vmatpush1.bf16.msra.mxu1 %v1708_v38  ;;  %1647 = vmatprep.subr.bf16.mxu0 %v1646_v39  ;;  %v180_v59 = vld [vmem:[#allocation8 + $0x2c8] sm:$0xff]  ;;  %v174_v60 = vld [vmem:[#allocation8 + $0x298] sm:$0xff]  ;;  %v1652_v62 = vpack.c.bf16 %v163_v54, %v155_v53  ;;  %v1716_v63 = vpack.c.bf16 %v165_v57, %v157_v55  ;;  %v171_v1 = vld [vmem:[#allocation8 + $0x280] sm:$0xff] }
  0x6a   :  { %1711 = vmatprep.subr.bf16.mxu1 %v1710_v43  ;;  %v182_v61 = vld [vmem:[#allocation8 + $0x2d8] sm:$0xff]  ;;  %v1654_v0 = vpack.c.bf16 %v180_v59, %v172_v58  ;;  %v179_v2 = vld [vmem:[#allocation8 + $0x2c0] sm:$0xff]  ;;  %v173_v3 = vld [vmem:[#allocation8 + $0x290] sm:$0xff] }
  0x6b   :  { %v1718_v4 = vpack.c.bf16 %v182_v61, %v174_v60  ;;  %v181_v5 = vld [vmem:[#allocation8 + $0x2d0] sm:$0xff]  ;;  %v188_v6 = vld [vmem:[#allocation8 + $0x308] sm:$0xff]  ;;  %v190_v8 = vld [vmem:[#allocation8 + $0x318] sm:$0xff]  ;;  %v1656_v10 = vpack.c.bf16 %v179_v2, %v171_v1 }
  0x6c   :  { %1649 = vmatpush1.bf16.msra.mxu0 %v1648_v50  ;;  %v196_v7 = vld [vmem:[#allocation8 + $0x348] sm:$0xff]  ;;  %v198_v9 = vld [vmem:[#allocation8 + $0x358] sm:$0xff]  ;;  %v1720_v11 = vpack.c.bf16 %v181_v5, %v173_v3  ;;  %v187_v13 = vld [vmem:[#allocation8 + $0x300] sm:$0xff] }
  0x6d   :  { %1713 = vmatpush1.bf16.msra.mxu1 %v1712_v51  ;;  %1651 = vmatprep.subr.bf16.mxu0 %v1650_v52  ;;  %v1658_v12 = vpack.c.bf16 %v196_v7, %v188_v6  ;;  %v195_v14 = vld [vmem:[#allocation8 + $0x340] sm:$0xff]  ;;  %v189_v15 = vld [vmem:[#allocation8 + $0x310] sm:$0xff]  ;;  %v1722_v16 = vpack.c.bf16 %v198_v9, %v190_v8  ;;  %v204_v18 = vld [vmem:[#allocation8 + $0x388] sm:$0xff] }
  0x6e   :  { %1715 = vmatprep.subr.bf16.mxu1 %v1714_v56  ;;  %v197_v17 = vld [vmem:[#allocation8 + $0x350] sm:$0xff]  ;;  %v212_v19 = vld [vmem:[#allocation8 + $0x3c8] sm:$0xff]  ;;  %v206_v20 = vld [vmem:[#allocation8 + $0x398] sm:$0xff]  ;;  %v1660_v22 = vpack.c.bf16 %v195_v14, %v187_v13 }
  0x6f   :  { %v214_v21 = vld [vmem:[#allocation8 + $0x3d8] sm:$0xff]  ;;  %v1724_v23 = vpack.c.bf16 %v197_v17, %v189_v15  ;;  %v1662_v24 = vpack.c.bf16 %v212_v19, %v204_v18  ;;  %v203_v25 = vld [vmem:[#allocation8 + $0x380] sm:$0xff]  ;;  %v205_v27 = vld [vmem:[#allocation8 + $0x390] sm:$0xff] }
  0x70   :  { %1653 = vmatpush1.bf16.msra.mxu0 %v1652_v62  ;;  %v211_v26 = vld [vmem:[#allocation8 + $0x3c0] sm:$0xff]  ;;  %v1726_v28 = vpack.c.bf16 %v214_v21, %v206_v20  ;;  %v213_v29 = vld [vmem:[#allocation8 + $0x3d0] sm:$0xff]  ;;  %v220_v30 = vld [vmem:[#allocation8 + $0x408] sm:$0xff] }
  0x71   :  { %1717 = vmatpush1.bf16.msra.mxu1 %v1716_v63  ;;  %1655 = vmatprep.subr.bf16.mxu0 %v1654_v0  ;;  %v228_v31 = vld [vmem:[#allocation8 + $0x448] sm:$0xff]  ;;  %v222_v32 = vld [vmem:[#allocation8 + $0x418] sm:$0xff]  ;;  %v1664_v34 = vpack.c.bf16 %v211_v26, %v203_v25  ;;  %v1728_v35 = vpack.c.bf16 %v213_v29, %v205_v27  ;;  %v219_v37 = vld [vmem:[#allocation8 + $0x400] sm:$0xff] }
  0x72   :  { %1719 = vmatprep.subr.bf16.mxu1 %v1718_v4  ;;  %v230_v33 = vld [vmem:[#allocation8 + $0x458] sm:$0xff]  ;;  %v1666_v36 = vpack.c.bf16 %v228_v31, %v220_v30  ;;  %v227_v38 = vld [vmem:[#allocation8 + $0x440] sm:$0xff]  ;;  %v221_v39 = vld [vmem:[#allocation8 + $0x410] sm:$0xff] }
  0x73   :  { %v1730_v40 = vpack.c.bf16 %v230_v33, %v222_v32  ;;  %v229_v41 = vld [vmem:[#allocation8 + $0x450] sm:$0xff]  ;;  %v236_v42 = vld [vmem:[#allocation8 + $0x488] sm:$0xff]  ;;  %v238_v44 = vld [vmem:[#allocation8 + $0x498] sm:$0xff]  ;;  %v1668_v46 = vpack.c.bf16 %v227_v38, %v219_v37 }
  0x74   :  { %1657 = vmatpush1.bf16.msra.mxu0 %v1656_v10  ;;  %v244_v43 = vld [vmem:[#allocation8 + $0x4c8] sm:$0xff]  ;;  %v246_v45 = vld [vmem:[#allocation8 + $0x4d8] sm:$0xff]  ;;  %v1732_v47 = vpack.c.bf16 %v229_v41, %v221_v39  ;;  %v235_v49 = vld [vmem:[#allocation8 + $0x480] sm:$0xff] }
  0x75   :  { %1721 = vmatpush1.bf16.msra.mxu1 %v1720_v11  ;;  %1659 = vmatprep.subr.bf16.mxu0 %v1658_v12  ;;  %v1670_v48 = vpack.c.bf16 %v244_v43, %v236_v42  ;;  %v243_v50 = vld [vmem:[#allocation8 + $0x4c0] sm:$0xff]  ;;  %v237_v51 = vld [vmem:[#allocation8 + $0x490] sm:$0xff]  ;;  %v1734_v52 = vpack.c.bf16 %v246_v45, %v238_v44  ;;  %v252_v54 = vld [vmem:[#allocation8 + $0x508] sm:$0xff] }
  0x76   :  { %1723 = vmatprep.subr.bf16.mxu1 %v1722_v16  ;;  %v245_v53 = vld [vmem:[#allocation8 + $0x4d0] sm:$0xff]  ;;  %v260_v55 = vld [vmem:[#allocation8 + $0x548] sm:$0xff]  ;;  %v254_v56 = vld [vmem:[#allocation8 + $0x518] sm:$0xff]  ;;  %v1672_v58 = vpack.c.bf16 %v243_v50, %v235_v49 }
  0x77   :  { %v262_v57 = vld [vmem:[#allocation8 + $0x558] sm:$0xff]  ;;  %v1736_v59 = vpack.c.bf16 %v245_v53, %v237_v51  ;;  %v1674_v60 = vpack.c.bf16 %v260_v55, %v252_v54  ;;  %v251_v61 = vld [vmem:[#allocation8 + $0x500] sm:$0xff]  ;;  %v253_v63 = vld [vmem:[#allocation8 + $0x510] sm:$0xff] }
  0x78   :  { %1661 = vmatpush1.bf16.msra.mxu0 %v1660_v22  ;;  %v259_v62 = vld [vmem:[#allocation8 + $0x540] sm:$0xff]  ;;  %v1738_v0 = vpack.c.bf16 %v262_v57, %v254_v56  ;;  %v261_v1 = vld [vmem:[#allocation8 + $0x550] sm:$0xff]  ;;  %v268_v2 = vld [vmem:[#allocation8 + $0x588] sm:$0xff] }
  0x79   :  { %1725 = vmatpush1.bf16.msra.mxu1 %v1724_v23  ;;  %1663 = vmatprep.subr.bf16.mxu0 %v1662_v24  ;;  %v276_v3 = vld [vmem:[#allocation8 + $0x5c8] sm:$0xff]  ;;  %v270_v4 = vld [vmem:[#allocation8 + $0x598] sm:$0xff]  ;;  %v1676_v6 = vpack.c.bf16 %v259_v62, %v251_v61  ;;  %v267_v7 = vld [vmem:[#allocation8 + $0x580] sm:$0xff]  ;;  %v1740_v8 = vpack.c.bf16 %v261_v1, %v253_v63 }
  0x7a   :  { %1727 = vmatprep.subr.bf16.mxu1 %v1726_v28  ;;  %v278_v5 = vld [vmem:[#allocation8 + $0x5d8] sm:$0xff]  ;;  %v1678_v9 = vpack.c.bf16 %v276_v3, %v268_v2  ;;  %v275_v10 = vld [vmem:[#allocation8 + $0x5c0] sm:$0xff]  ;;  %v269_v11 = vld [vmem:[#allocation8 + $0x590] sm:$0xff] }
  0x7b   :  { %v277_v12 = vld [vmem:[#allocation8 + $0x5d0] sm:$0xff]  ;;  %v1742_v13 = vpack.c.bf16 %v278_v5, %v270_v4  ;;  %v284_v14 = vld [vmem:[#allocation8 + $0x608] sm:$0xff]  ;;  %v286_v17 = vld [vmem:[#allocation8 + $0x618] sm:$0xff]  ;;  %v1680_v19 = vpack.c.bf16 %v275_v10, %v267_v7 }
  0x7c   :  { %1665 = vmatpush1.bf16.msra.mxu0 %v1664_v34  ;;  %v292_v15 = vld [vmem:[#allocation8 + $0x648] sm:$0xff]  ;;  %v2528_v16 = vld [vmem:[#allocation2 + $0x8] sm:$0xff]  ;;  %v294_v18 = vld [vmem:[#allocation8 + $0x658] sm:$0xff]  ;;  %v1744_v20 = vpack.c.bf16 %v277_v12, %v269_v11 }
  0x7d   :  { %1729 = vmatpush1.bf16.msra.mxu1 %v1728_v35  ;;  %1667 = vmatprep.subr.bf16.mxu0 %v1666_v36  ;;  %v1682_v21 = vpack.c.bf16 %v292_v15, %v284_v14  ;;  %v283_v22 = vld [vmem:[#allocation8 + $0x600] sm:$0xff]  ;;  %v285_v24 = vld [vmem:[#allocation8 + $0x610] sm:$0xff]  ;;  %v1746_v25 = vpack.c.bf16 %v294_v18, %v286_v17  ;;  %v300_v27 = vld [vmem:[#allocation8 + $0x688] sm:$0xff] }
  0x7e   :  { %1731 = vmatprep.subr.bf16.mxu1 %v1730_v40  ;;  %411 = vmatprep.mubr.f32.mxu0 %v2528_v16  ;;  %v291_v23 = vld [vmem:[#allocation8 + $0x640] sm:$0xff]  ;;  %v293_v26 = vld [vmem:[#allocation8 + $0x650] sm:$0xff]  ;;  %v308_v28 = vld [vmem:[#allocation8 + $0x6c8] sm:$0xff] }
  0x7f   :  { %482 = vmatprep.mubr.f32.mxu1 %v2528_v16  ;;  %v302_v29 = vld [vmem:[#allocation8 + $0x698] sm:$0xff]  ;;  %v1684_v31 = vpack.c.bf16 %v291_v23, %v283_v22  ;;  %v1748_v32 = vpack.c.bf16 %v293_v26, %v285_v24  ;;  %v1686_v33 = vpack.c.bf16 %v308_v28, %v300_v27  ;;  %v299_v34 = vld [vmem:[#allocation8 + $0x680] sm:$0xff]  ;;  %v301_v36 = vld [vmem:[#allocation8 + $0x690] sm:$0xff] }
  0x80   :  { %1669 = vmatpush1.bf16.msra.mxu0 %v1668_v46  ;;  %v310_v30 = vld [vmem:[#allocation8 + $0x6d8] sm:$0xff]  ;;  %v307_v35 = vld [vmem:[#allocation8 + $0x6c0] sm:$0xff]  ;;  %v309_v38 = vld [vmem:[#allocation8 + $0x6d0] sm:$0xff] }
  0x81   :  { %1733 = vmatpush1.bf16.msra.mxu1 %v1732_v47  ;;  %1671 = vmatprep.subr.bf16.mxu0 %v1670_v48  ;;  %v1750_v37 = vpack.c.bf16 %v310_v30, %v302_v29  ;;  %v316_v39 = vld [vmem:[#allocation8 + $0x708] sm:$0xff]  ;;  %v318_v41 = vld [vmem:[#allocation8 + $0x718] sm:$0xff]  ;;  %v1688_v43 = vpack.c.bf16 %v307_v35, %v299_v34  ;;  %v1752_v44 = vpack.c.bf16 %v309_v38, %v301_v36  ;;  %v315_v46 = vld [vmem:[#allocation8 + $0x700] sm:$0xff] }
  0x82   :  { %1735 = vmatprep.subr.bf16.mxu1 %v1734_v52  ;;  %v324_v40 = vld [vmem:[#allocation8 + $0x748] sm:$0xff]  ;;  %v326_v42 = vld [vmem:[#allocation8 + $0x758] sm:$0xff]  ;;  %v323_v47 = vld [vmem:[#allocation8 + $0x740] sm:$0xff] }
  0x83   :  { %v1690_v45 = vpack.c.bf16 %v324_v40, %v316_v39  ;;  %v317_v48 = vld [vmem:[#allocation8 + $0x710] sm:$0xff]  ;;  %v1754_v49 = vpack.c.bf16 %v326_v42, %v318_v41  ;;  %v332_v51 = vld [vmem:[#allocation8 + $0x788] sm:$0xff]  ;;  %v334_v53 = vld [vmem:[#allocation8 + $0x798] sm:$0xff]  ;;  %v1692_v55 = vpack.c.bf16 %v323_v47, %v315_v46 }
  0x84   :  { %1673 = vmatpush1.bf16.msra.mxu0 %v1672_v58  ;;  %v325_v50 = vld [vmem:[#allocation8 + $0x750] sm:$0xff]  ;;  %v340_v52 = vld [vmem:[#allocation8 + $0x7c8] sm:$0xff]  ;;  %v342_v54 = vld [vmem:[#allocation8 + $0x7d8] sm:$0xff] }
  0x85   :  { %1737 = vmatpush1.bf16.msra.mxu1 %v1736_v59  ;;  %1675 = vmatprep.subr.bf16.mxu0 %v1674_v60  ;;  %v1756_v56 = vpack.c.bf16 %v325_v50, %v317_v48  ;;  %v1694_v57 = vpack.c.bf16 %v340_v52, %v332_v51  ;;  %v331_v58 = vld [vmem:[#allocation8 + $0x780] sm:$0xff]  ;;  %v333_v60 = vld [vmem:[#allocation8 + $0x790] sm:$0xff]  ;;  %v1758_v61 = vpack.c.bf16 %v342_v54, %v334_v53  ;;  %v96_v63 = vld [vmem:[#allocation8 + $0x28] sm:$0xff] }
  0x86   :  { %1739 = vmatprep.subr.bf16.mxu1 %v1738_v0  ;;  %v339_v59 = vld [vmem:[#allocation8 + $0x7c0] sm:$0xff]  ;;  %v341_v62 = vld [vmem:[#allocation8 + $0x7d0] sm:$0xff]  ;;  %v104_v0 = vld [vmem:[#allocation8 + $0x68] sm:$0xff] }
  0x87   :  { %v98_v1 = vld [vmem:[#allocation8 + $0x38] sm:$0xff]  ;;  %v1696_v3 = vpack.c.bf16 %v339_v59, %v331_v58  ;;  %v1760_v4 = vpack.c.bf16 %v341_v62, %v333_v60  ;;  %v1762_v5 = vpack.c.bf16 %v104_v0, %v96_v63  ;;  %v103_v7 = vld [vmem:[#allocation8 + $0x60] sm:$0xff]  ;;  %v105_v10 = vld [vmem:[#allocation8 + $0x70] sm:$0xff] }
  0x88   :  { %1677 = vmatpush1.bf16.msra.mxu0 %v1676_v6  ;;  %v106_v2 = vld [vmem:[#allocation8 + $0x78] sm:$0xff]  ;;  %v95_v6 = vld [vmem:[#allocation8 + $0x20] sm:$0xff]  ;;  %v112_v11 = vld [vmem:[#allocation8 + $0xa8] sm:$0xff] }
  0x89   :  { %1741 = vmatpush1.bf16.msra.mxu1 %v1740_v8  ;;  %1679 = vmatprep.subr.bf16.mxu0 %v1678_v9  ;;  %v97_v8 = vld [vmem:[#allocation8 + $0x30] sm:$0xff]  ;;  %v1826_v9 = vpack.c.bf16 %v106_v2, %v98_v1  ;;  %v120_v12 = vld [vmem:[#allocation8 + $0xe8] sm:$0xff]  ;;  %v122_v14 = vld [vmem:[#allocation8 + $0xf8] sm:$0xff]  ;;  %v1764_v17 = vpack.c.bf16 %v103_v7, %v95_v6 }
  0x8a   :  { %1743 = vmatprep.subr.bf16.mxu1 %v1742_v13  ;;  %v114_v13 = vld [vmem:[#allocation8 + $0xb8] sm:$0xff]  ;;  %v2532_v15 = vld [vmem:[#allocation2] sm:$0xff]  ;;  %v1828_v18 = vpack.c.bf16 %v105_v10, %v97_v8  ;;  %v113_v22 = vld [vmem:[#allocation8 + $0xb0] sm:$0xff] }
  0x8b   :  { %v1830_v23 = vpack.c.bf16 %v122_v14, %v114_v13  ;;  %v121_v24 = vld [vmem:[#allocation8 + $0xf0] sm:$0xff]  ;;  %v136_v26 = vld [vmem:[#allocation8 + $0x168] sm:$0xff]  ;;  %v130_v27 = vld [vmem:[#allocation8 + $0x138] sm:$0xff] }
  0x8c   :  { %1681 = vmatpush1.bf16.msra.mxu0 %v1680_v19  ;;  %v1766_v19 = vpack.c.bf16 %v120_v12, %v112_v11  ;;  %v138_v28 = vld [vmem:[#allocation8 + $0x178] sm:$0xff]  ;;  %v1832_v30 = vpack.c.bf16 %v121_v24, %v113_v22  ;;  %v129_v34 = vld [vmem:[#allocation8 + $0x130] sm:$0xff]  ;;  %v152_v38 = vld [vmem:[#allocation8 + $0x1e8] sm:$0xff] }
  0x8d   :  { %1745 = vmatpush1.bf16.msra.mxu1 %v1744_v20  ;;  %1683 = vmatprep.subr.bf16.mxu0 %v1682_v21  ;;  %v111_v20 = vld [vmem:[#allocation8 + $0xa0] sm:$0xff]  ;;  %v1834_v35 = vpack.c.bf16 %v138_v28, %v130_v27  ;;  %v137_v36 = vld [vmem:[#allocation8 + $0x170] sm:$0xff]  ;;  %v146_v39 = vld [vmem:[#allocation8 + $0x1b8] sm:$0xff] }
  0x8e   :  { %1747 = vmatprep.subr.bf16.mxu1 %v1746_v25  ;;  %v119_v21 = vld [vmem:[#allocation8 + $0xe0] sm:$0xff]  ;;  %v128_v25 = vld [vmem:[#allocation8 + $0x128] sm:$0xff]  ;;  %v154_v40 = vld [vmem:[#allocation8 + $0x1f8] sm:$0xff]  ;;  %v1836_v42 = vpack.c.bf16 %v137_v36, %v129_v34 }
  0x8f   :  { %v1768_v29 = vpack.c.bf16 %v119_v21, %v111_v20  ;;  %v145_v46 = vld [vmem:[#allocation8 + $0x1b0] sm:$0xff]  ;;  %v1838_v47 = vpack.c.bf16 %v154_v40, %v146_v39  ;;  %v168_v50 = vld [vmem:[#allocation8 + $0x268] sm:$0xff]  ;;  %v162_v51 = vld [vmem:[#allocation8 + $0x238] sm:$0xff] }
  0x90   :  { %1685 = vmatpush1.bf16.msra.mxu0 %v1684_v31  ;;  %v1770_v31 = vpack.c.bf16 %v136_v26, %v128_v25  ;;  %v153_v48 = vld [vmem:[#allocation8 + $0x1f0] sm:$0xff]  ;;  %v170_v52 = vld [vmem:[#allocation8 + $0x278] sm:$0xff]  ;;  %v176_v60 = vld [vmem:[#allocation8 + $0x2a8] sm:$0xff] }
  0x91   :  { %1749 = vmatpush1.bf16.msra.mxu1 %v1748_v32  ;;  %1687 = vmatprep.subr.bf16.mxu0 %v1686_v33  ;;  %v127_v32 = vld [vmem:[#allocation8 + $0x120] sm:$0xff]  ;;  %v1842_v58 = vpack.c.bf16 %v170_v52, %v162_v51  ;;  %v169_v59 = vld [vmem:[#allocation8 + $0x270] sm:$0xff]  ;;  %v178_v62 = vld [vmem:[#allocation8 + $0x2b8] sm:$0xff] }
  0x92   :  { %1751 = vmatprep.subr.bf16.mxu1 %v1750_v37  ;;  %v135_v33 = vld [vmem:[#allocation8 + $0x160] sm:$0xff]  ;;  %v144_v37 = vld [vmem:[#allocation8 + $0x1a8] sm:$0xff]  ;;  %v186_v63 = vld [vmem:[#allocation8 + $0x2f8] sm:$0xff] }
  0x93   :  { %v1772_v41 = vpack.c.bf16 %v135_v33, %v127_v32  ;;  %v1846_v6 = vpack.c.bf16 %v186_v63, %v178_v62  ;;  %v185_v7 = vld [vmem:[#allocation8 + $0x2f0] sm:$0xff]  ;;  %v192_v8 = vld [vmem:[#allocation8 + $0x328] sm:$0xff]  ;;  %v194_v10 = vld [vmem:[#allocation8 + $0x338] sm:$0xff] }
  0x94   :  { %1689 = vmatpush1.bf16.msra.mxu0 %v1688_v43  ;;  %v1774_v43 = vpack.c.bf16 %v152_v38, %v144_v37  ;;  %v202_v11 = vld [vmem:[#allocation8 + $0x378] sm:$0xff]  ;;  %v201_v21 = vld [vmem:[#allocation8 + $0x370] sm:$0xff]  ;;  %v208_v22 = vld [vmem:[#allocation8 + $0x3a8] sm:$0xff] }
  0x95   :  { %1753 = vmatpush1.bf16.msra.mxu1 %v1752_v44  ;;  %1691 = vmatprep.subr.bf16.mxu0 %v1690_v45  ;;  %v143_v44 = vld [vmem:[#allocation8 + $0x1a0] sm:$0xff]  ;;  %v1850_v20 = vpack.c.bf16 %v202_v11, %v194_v10  ;;  %v210_v24 = vld [vmem:[#allocation8 + $0x3b8] sm:$0xff]  ;;  %v217_v33 = vld [vmem:[#allocation8 + $0x3f0] sm:$0xff] }
  0x96   :  { %1755 = vmatprep.subr.bf16.mxu1 %v1754_v49  ;;  %v151_v45 = vld [vmem:[#allocation8 + $0x1e0] sm:$0xff]  ;;  %v160_v49 = vld [vmem:[#allocation8 + $0x228] sm:$0xff]  ;;  %v218_v25 = vld [vmem:[#allocation8 + $0x3f8] sm:$0xff] }
  0x97   :  { %v1776_v53 = vpack.c.bf16 %v151_v45, %v143_v44  ;;  %v1778_v54 = vpack.c.bf16 %v168_v50, %v160_v49  ;;  %v1854_v32 = vpack.c.bf16 %v218_v25, %v210_v24  ;;  %v224_v34 = vld [vmem:[#allocation8 + $0x428] sm:$0xff]  ;;  %v226_v36 = vld [vmem:[#allocation8 + $0x438] sm:$0xff]  ;;  %v233_v45 = vld [vmem:[#allocation8 + $0x470] sm:$0xff] }
  0x98   :  { %1693 = vmatpush1.bf16.msra.mxu0 %v1692_v55  ;;  %v159_v55 = vld [vmem:[#allocation8 + $0x220] sm:$0xff]  ;;  %v234_v37 = vld [vmem:[#allocation8 + $0x478] sm:$0xff] }
  0x99   :  { %1757 = vmatpush1.bf16.msra.mxu1 %v1756_v56  ;;  %1695 = vmatprep.subr.bf16.mxu0 %v1694_v57  ;;  %v167_v56 = vld [vmem:[#allocation8 + $0x260] sm:$0xff]  ;;  %v161_v57 = vld [vmem:[#allocation8 + $0x230] sm:$0xff]  ;;  %v1858_v44 = vpack.c.bf16 %v234_v37, %v226_v36  ;;  %v250_v49 = vld [vmem:[#allocation8 + $0x4f8] sm:$0xff] }
  0x9a   :  { %1759 = vmatprep.subr.bf16.mxu1 %v1758_v61  ;;  %v184_v61 = vld [vmem:[#allocation8 + $0x2e8] sm:$0xff]  ;;  %v1780_v0 = vpack.c.bf16 %v167_v56, %v159_v55  ;;  %v1844_v1 = vpack.c.bf16 %v169_v59, %v161_v57  ;;  %v249_v56 = vld [vmem:[#allocation8 + $0x4f0] sm:$0xff]  ;;  %v258_v59 = vld [vmem:[#allocation8 + $0x538] sm:$0xff] }
  0x9b   :  { %v1782_v2 = vpack.c.bf16 %v184_v61, %v176_v60  ;;  %v256_v57 = vld [vmem:[#allocation8 + $0x528] sm:$0xff]  ;;  %v266_v60 = vld [vmem:[#allocation8 + $0x578] sm:$0xff] }
  0x9c   :  { %1697 = vmatpush1.bf16.msra.mxu0 %v1696_v3  ;;  %v175_v3 = vld [vmem:[#allocation8 + $0x2a0] sm:$0xff] }
  0x9d   :  { %1761 = vmatpush1.bf16.msra.mxu1 %v1760_v4  ;;  %1763 = vmatprep.subr.bf16.mxu0 %v1762_v5  ;;  %v183_v4 = vld [vmem:[#allocation8 + $0x2e0] sm:$0xff]  ;;  %v177_v5 = vld [vmem:[#allocation8 + $0x2b0] sm:$0xff] }
  0x9e   :  { %1827 = vmatprep.subr.bf16.mxu1 %v1826_v9  ;;  %v200_v9 = vld [vmem:[#allocation8 + $0x368] sm:$0xff]  ;;  %v1784_v12 = vpack.c.bf16 %v183_v4, %v175_v3  ;;  %v1848_v13 = vpack.c.bf16 %v185_v7, %v177_v5  ;;  %v1866_v3 = vpack.c.bf16 %v266_v60, %v258_v59  ;;  %v265_v4 = vld [vmem:[#allocation8 + $0x570] sm:$0xff]  ;;  %v274_v7 = vld [vmem:[#allocation8 + $0x5b8] sm:$0xff] }
  0x9f   :  { %412 = vmatmul.mubr.f32.vlgmr.msra.gmra.mrb[0].mxu0 %v2532_v15  ;;  %v1786_v14 = vpack.c.bf16 %v200_v9, %v192_v8  ;;  %v272_v5 = vld [vmem:[#allocation8 + $0x5a8] sm:$0xff]  ;;  %v282_v8 = vld [vmem:[#allocation8 + $0x5f8] sm:$0xff] }
  0xa0   :  { %483 = vmatmul.mubr.f32.vlgmr.msra.gmra.mrb[0].mxu1 %v2532_v15  ;;  %1765 = vmatpush1.bf16.msra.mxu0 %v1764_v17  ;;  %v191_v17 = vld [vmem:[#allocation8 + $0x320] sm:$0xff] }
  0xa1   :  { %1829 = vmatpush1.bf16.msra.mxu1 %v1828_v18  ;;  %1767 = vmatprep.subr.bf16.mxu0 %v1766_v19  ;;  %v199_v18 = vld [vmem:[#allocation8 + $0x360] sm:$0xff]  ;;  %v193_v19 = vld [vmem:[#allocation8 + $0x330] sm:$0xff] }
  0xa2   :  { %1831 = vmatprep.subr.bf16.mxu1 %v1830_v23  ;;  %553 = vmatprep.mubr.f32.mxu0 %v2528_v16  ;;  %v216_v23 = vld [vmem:[#allocation8 + $0x3e8] sm:$0xff]  ;;  %v1788_v26 = vpack.c.bf16 %v199_v18, %v191_v17  ;;  %v1852_v27 = vpack.c.bf16 %v201_v21, %v193_v19  ;;  %v1870_v17 = vpack.c.bf16 %v282_v8, %v274_v7  ;;  %v281_v18 = vld [vmem:[#allocation8 + $0x5f0] sm:$0xff]  ;;  %v290_v21 = vld [vmem:[#allocation8 + $0x638] sm:$0xff] }
  0xa3   :  { %624 = vmatprep.mubr.f32.mxu1 %v2528_v16  ;;  %v1840_v16 = vpack.c.bf16 %v153_v48, %v145_v46  ;;  %v1790_v28 = vpack.c.bf16 %v216_v23, %v208_v22  ;;  %v240_v46 = vld [vmem:[#allocation8 + $0x4a8] sm:$0xff]  ;;  %v242_v48 = vld [vmem:[#allocation8 + $0x4b8] sm:$0xff] }
  0xa4   :  { %1769 = vmatpush1.bf16.msra.mxu0 %v1768_v29  ;;  %v207_v29 = vld [vmem:[#allocation8 + $0x3a0] sm:$0xff]  ;;  %v1862_v55 = vpack.c.bf16 %v250_v49, %v242_v48  ;;  %v288_v19 = vld [vmem:[#allocation8 + $0x628] sm:$0xff]  ;;  %v298_v22 = vld [vmem:[#allocation8 + $0x678] sm:$0xff] }
  0xa5   :  { %1833 = vmatpush1.bf16.msra.mxu1 %v1832_v30  ;;  %1771 = vmatprep.subr.bf16.mxu0 %v1770_v31  ;;  %v215_v30 = vld [vmem:[#allocation8 + $0x3e0] sm:$0xff]  ;;  %v209_v31 = vld [vmem:[#allocation8 + $0x3b0] sm:$0xff] }
  0xa6   :  { %1835 = vmatprep.subr.bf16.mxu1 %v1834_v35  ;;  %v232_v35 = vld [vmem:[#allocation8 + $0x468] sm:$0xff]  ;;  %v1792_v38 = vpack.c.bf16 %v215_v30, %v207_v29  ;;  %v1856_v39 = vpack.c.bf16 %v217_v33, %v209_v31  ;;  %v1874_v29 = vpack.c.bf16 %v298_v22, %v290_v21  ;;  %v297_v30 = vld [vmem:[#allocation8 + $0x670] sm:$0xff]  ;;  %v306_v33 = vld [vmem:[#allocation8 + $0x6b8] sm:$0xff] }
  0xa7   :  { %v1794_v40 = vpack.c.bf16 %v232_v35, %v224_v34  ;;  %v304_v31 = vld [vmem:[#allocation8 + $0x6a8] sm:$0xff]  ;;  %v314_v34 = vld [vmem:[#allocation8 + $0x6f8] sm:$0xff] }
  0xa8   :  { %1773 = vmatpush1.bf16.msra.mxu0 %v1772_v41  ;;  %v223_v41 = vld [vmem:[#allocation8 + $0x420] sm:$0xff] }
  0xa9   :  { %1837 = vmatpush1.bf16.msra.mxu1 %v1836_v42  ;;  %1775 = vmatprep.subr.bf16.mxu0 %v1774_v43  ;;  %v231_v42 = vld [vmem:[#allocation8 + $0x460] sm:$0xff]  ;;  %v225_v43 = vld [vmem:[#allocation8 + $0x430] sm:$0xff] }
  0xaa   :  { %1839 = vmatprep.subr.bf16.mxu1 %v1838_v47  ;;  %v248_v47 = vld [vmem:[#allocation8 + $0x4e8] sm:$0xff]  ;;  %v1796_v50 = vpack.c.bf16 %v231_v42, %v223_v41  ;;  %v1860_v51 = vpack.c.bf16 %v233_v45, %v225_v43  ;;  %v1878_v41 = vpack.c.bf16 %v314_v34, %v306_v33  ;;  %v313_v42 = vld [vmem:[#allocation8 + $0x6f0] sm:$0xff]  ;;  %v322_v45 = vld [vmem:[#allocation8 + $0x738] sm:$0xff] }
  0xab   :  { %v1798_v52 = vpack.c.bf16 %v248_v47, %v240_v46  ;;  %v320_v43 = vld [vmem:[#allocation8 + $0x728] sm:$0xff]  ;;  %v330_v46 = vld [vmem:[#allocation8 + $0x778] sm:$0xff] }
  0xac   :  { %1777 = vmatpush1.bf16.msra.mxu0 %v1776_v53  ;;  %v239_v53 = vld [vmem:[#allocation8 + $0x4a0] sm:$0xff] }
  0xad   :  { %1841 = vmatpush1.bf16.msra.mxu1 %v1840_v16  ;;  %1779 = vmatprep.subr.bf16.mxu0 %v1778_v54  ;;  %v247_v16 = vld [vmem:[#allocation8 + $0x4e0] sm:$0xff]  ;;  %v241_v54 = vld [vmem:[#allocation8 + $0x4b0] sm:$0xff] }
  0xae   :  { %1843 = vmatprep.subr.bf16.mxu1 %v1842_v58  ;;  %v264_v58 = vld [vmem:[#allocation8 + $0x568] sm:$0xff]  ;;  %v1800_v61 = vpack.c.bf16 %v247_v16, %v239_v53  ;;  %v1864_v62 = vpack.c.bf16 %v249_v56, %v241_v54  ;;  %v1882_v53 = vpack.c.bf16 %v330_v46, %v322_v45  ;;  %v329_v16 = vld [vmem:[#allocation8 + $0x770] sm:$0xff]  ;;  %v338_v56 = vld [vmem:[#allocation8 + $0x7b8] sm:$0xff] }
  0xaf   :  { %v1802_v63 = vpack.c.bf16 %v264_v58, %v256_v57  ;;  %v336_v54 = vld [vmem:[#allocation8 + $0x7a8] sm:$0xff]  ;;  %v346_v57 = vld [vmem:[#allocation8 + $0x7f8] sm:$0xff] }
  0xb0   :  { %1781 = vmatpush1.bf16.msra.mxu0 %v1780_v0  ;;  %v255_v0 = vld [vmem:[#allocation8 + $0x520] sm:$0xff] }
  0xb1   :  { %1845 = vmatpush1.bf16.msra.mxu1 %v1844_v1  ;;  %1783 = vmatprep.subr.bf16.mxu0 %v1782_v2  ;;  %v263_v1 = vld [vmem:[#allocation8 + $0x560] sm:$0xff]  ;;  %v257_v2 = vld [vmem:[#allocation8 + $0x530] sm:$0xff] }
  0xb2   :  { %1847 = vmatprep.subr.bf16.mxu1 %v1846_v6  ;;  %v280_v6 = vld [vmem:[#allocation8 + $0x5e8] sm:$0xff]  ;;  %v1804_v9 = vpack.c.bf16 %v263_v1, %v255_v0  ;;  %v1868_v10 = vpack.c.bf16 %v265_v4, %v257_v2  ;;  %v1886_v0 = vpack.c.bf16 %v346_v57, %v338_v56  ;;  %v345_v1 = vld [vmem:[#allocation8 + $0x7f0] sm:$0xff]  ;;  %v646_v4 = vld [vmem:[#allocation8 + $0x18] sm:$0xff] }
  0xb3   :  { %v1806_v11 = vpack.c.bf16 %v280_v6, %v272_v5  ;;  %v644_v2 = vld [vmem:[#allocation8 + $0x8] sm:$0xff]  ;;  %v654_v5 = vld [vmem:[#allocation8 + $0x58] sm:$0xff] }
  0xb4   :  { %1785 = vmatpush1.bf16.msra.mxu0 %v1784_v12  ;;  %v271_v12 = vld [vmem:[#allocation8 + $0x5a0] sm:$0xff] }
  0xb5   :  { %1849 = vmatpush1.bf16.msra.mxu1 %v1848_v13  ;;  %1787 = vmatprep.subr.bf16.mxu0 %v1786_v14  ;;  %v279_v13 = vld [vmem:[#allocation8 + $0x5e0] sm:$0xff]  ;;  %v273_v14 = vld [vmem:[#allocation8 + $0x5b0] sm:$0xff] }
  0xb6   :  { %1851 = vmatprep.subr.bf16.mxu1 %v1850_v20  ;;  %v296_v20 = vld [vmem:[#allocation8 + $0x668] sm:$0xff]  ;;  %v1808_v23 = vpack.c.bf16 %v279_v13, %v271_v12  ;;  %v1872_v24 = vpack.c.bf16 %v281_v18, %v273_v14  ;;  %v1954_v12 = vpack.c.bf16 %v654_v5, %v646_v4  ;;  %v653_v13 = vld [vmem:[#allocation8 + $0x50] sm:$0xff]  ;;  %v662_v18 = vld [vmem:[#allocation8 + $0x98] sm:$0xff] }
  0xb7   :  { %v1810_v25 = vpack.c.bf16 %v296_v20, %v288_v19  ;;  %v660_v14 = vld [vmem:[#allocation8 + $0x88] sm:$0xff]  ;;  %v670_v19 = vld [vmem:[#allocation8 + $0xd8] sm:$0xff] }
  0xb8   :  { %1789 = vmatpush1.bf16.msra.mxu0 %v1788_v26  ;;  %v287_v26 = vld [vmem:[#allocation8 + $0x620] sm:$0xff] }
  0xb9   :  { %1853 = vmatpush1.bf16.msra.mxu1 %v1852_v27  ;;  %1791 = vmatprep.subr.bf16.mxu0 %v1790_v28  ;;  %v295_v27 = vld [vmem:[#allocation8 + $0x660] sm:$0xff]  ;;  %v289_v28 = vld [vmem:[#allocation8 + $0x630] sm:$0xff] }
  0xba   :  { %1855 = vmatprep.subr.bf16.mxu1 %v1854_v32  ;;  %v312_v32 = vld [vmem:[#allocation8 + $0x6e8] sm:$0xff]  ;;  %v1812_v35 = vpack.c.bf16 %v295_v27, %v287_v26  ;;  %v1876_v36 = vpack.c.bf16 %v297_v30, %v289_v28  ;;  %v1958_v26 = vpack.c.bf16 %v670_v19, %v662_v18  ;;  %v669_v27 = vld [vmem:[#allocation8 + $0xd0] sm:$0xff]  ;;  %v678_v30 = vld [vmem:[#allocation8 + $0x118] sm:$0xff] }
  0xbb   :  { %v1814_v37 = vpack.c.bf16 %v312_v32, %v304_v31  ;;  %v676_v28 = vld [vmem:[#allocation8 + $0x108] sm:$0xff]  ;;  %v686_v31 = vld [vmem:[#allocation8 + $0x158] sm:$0xff]  ;;  %v2539_v32 = vld [vmem:[#allocation5 + $0x8] sm:$0xff] }
  0xbc   :  { %1793 = vmatpush1.bf16.msra.mxu0 %v1792_v38  ;;  %v303_v38 = vld [vmem:[#allocation8 + $0x6a0] sm:$0xff] }
  0xbd   :  { %1857 = vmatpush1.bf16.msra.mxu1 %v1856_v39  ;;  %1795 = vmatprep.subr.bf16.mxu0 %v1794_v40  ;;  %v311_v39 = vld [vmem:[#allocation8 + $0x6e0] sm:$0xff]  ;;  %v305_v40 = vld [vmem:[#allocation8 + $0x6b0] sm:$0xff] }
  0xbe   :  { %1859 = vmatprep.subr.bf16.mxu1 %v1858_v44  ;;  %v328_v44 = vld [vmem:[#allocation8 + $0x768] sm:$0xff]  ;;  %v1816_v47 = vpack.c.bf16 %v311_v39, %v303_v38  ;;  %v1880_v48 = vpack.c.bf16 %v313_v42, %v305_v40  ;;  %v677_v38 = vld [vmem:[#allocation8 + $0x110] sm:$0xff]  ;;  %v1962_v39 = vpack.c.bf16 %v686_v31, %v678_v30 }
  0xbf   :  { %v1818_v49 = vpack.c.bf16 %v328_v44, %v320_v43  ;;  %v685_v40 = vld [vmem:[#allocation8 + $0x150] sm:$0xff]  ;;  %v700_v42 = vld [vmem:[#allocation8 + $0x1c8] sm:$0xff]  ;;  %v694_v43 = vld [vmem:[#allocation8 + $0x198] sm:$0xff] }
  0xc0   :  { %1797 = vmatpush1.bf16.msra.mxu0 %v1796_v50  ;;  %v319_v50 = vld [vmem:[#allocation8 + $0x720] sm:$0xff]  ;;  %v702_v44 = vld [vmem:[#allocation8 + $0x1d8] sm:$0xff]  ;;  %v1964_v45 = vpack.c.bf16 %v685_v40, %v677_v38  ;;  %v772_v38 = vld [vmem:[#allocation8 + $0x408] sm:$0xff] }
  0xc1   :  { %1861 = vmatpush1.bf16.msra.mxu1 %v1860_v51  ;;  %1799 = vmatprep.subr.bf16.mxu0 %v1798_v52  ;;  %v327_v51 = vld [vmem:[#allocation8 + $0x760] sm:$0xff]  ;;  %v321_v52 = vld [vmem:[#allocation8 + $0x730] sm:$0xff]  ;;  %v774_v40 = vld [vmem:[#allocation8 + $0x418] sm:$0xff] }
  0xc2   :  { %1863 = vmatprep.subr.bf16.mxu1 %v1862_v55  ;;  %v344_v55 = vld [vmem:[#allocation8 + $0x7e8] sm:$0xff]  ;;  %v1820_v58 = vpack.c.bf16 %v327_v51, %v319_v50  ;;  %v1884_v59 = vpack.c.bf16 %v329_v16, %v321_v52  ;;  %v1966_v50 = vpack.c.bf16 %v702_v44, %v694_v43  ;;  %v701_v51 = vld [vmem:[#allocation8 + $0x1d0] sm:$0xff]  ;;  %v710_v16 = vld [vmem:[#allocation8 + $0x218] sm:$0xff] }
  0xc3   :  { %v1822_v60 = vpack.c.bf16 %v344_v55, %v336_v54  ;;  %v708_v52 = vld [vmem:[#allocation8 + $0x208] sm:$0xff]  ;;  %v718_v54 = vld [vmem:[#allocation8 + $0x258] sm:$0xff] }
  0xc4   :  { %1801 = vmatpush1.bf16.msra.mxu0 %v1800_v61  ;;  %v335_v61 = vld [vmem:[#allocation8 + $0x7a0] sm:$0xff] }
  0xc5   :  { %1865 = vmatpush1.bf16.msra.mxu1 %v1864_v62  ;;  %1803 = vmatprep.subr.bf16.mxu0 %v1802_v63  ;;  %v343_v62 = vld [vmem:[#allocation8 + $0x7e0] sm:$0xff]  ;;  %v337_v63 = vld [vmem:[#allocation8 + $0x7b0] sm:$0xff] }
  0xc6   :  { %1867 = vmatprep.subr.bf16.mxu1 %v1866_v3  ;;  %v652_v3 = vld [vmem:[#allocation8 + $0x48] sm:$0xff]  ;;  %v1824_v6 = vpack.c.bf16 %v343_v62, %v335_v61  ;;  %v1888_v7 = vpack.c.bf16 %v345_v1, %v337_v63  ;;  %v1970_v61 = vpack.c.bf16 %v718_v54, %v710_v16  ;;  %v717_v62 = vld [vmem:[#allocation8 + $0x250] sm:$0xff]  ;;  %v726_v1 = vld [vmem:[#allocation8 + $0x298] sm:$0xff] }
  0xc7   :  { %v1890_v8 = vpack.c.bf16 %v652_v3, %v644_v2  ;;  %v724_v63 = vld [vmem:[#allocation8 + $0x288] sm:$0xff]  ;;  %v734_v2 = vld [vmem:[#allocation8 + $0x2d8] sm:$0xff] }
  0xc8   :  { %1805 = vmatpush1.bf16.msra.mxu0 %v1804_v9  ;;  %v643_v9 = vld [vmem:[#allocation8] sm:$0xff] }
  0xc9   :  { %1869 = vmatpush1.bf16.msra.mxu1 %v1868_v10  ;;  %1807 = vmatprep.subr.bf16.mxu0 %v1806_v11  ;;  %v651_v10 = vld [vmem:[#allocation8 + $0x40] sm:$0xff]  ;;  %v645_v11 = vld [vmem:[#allocation8 + $0x10] sm:$0xff] }
  0xca   :  { %1871 = vmatprep.subr.bf16.mxu1 %v1870_v17  ;;  %v668_v17 = vld [vmem:[#allocation8 + $0xc8] sm:$0xff]  ;;  %v1892_v20 = vpack.c.bf16 %v651_v10, %v643_v9  ;;  %v1956_v21 = vpack.c.bf16 %v653_v13, %v645_v11  ;;  %v1974_v9 = vpack.c.bf16 %v734_v2, %v726_v1  ;;  %v733_v10 = vld [vmem:[#allocation8 + $0x2d0] sm:$0xff]  ;;  %v742_v13 = vld [vmem:[#allocation8 + $0x318] sm:$0xff] }
  0xcb   :  { %v1894_v22 = vpack.c.bf16 %v668_v17, %v660_v14  ;;  %v740_v11 = vld [vmem:[#allocation8 + $0x308] sm:$0xff]  ;;  %v750_v14 = vld [vmem:[#allocation8 + $0x358] sm:$0xff] }
  0xcc   :  { %1809 = vmatpush1.bf16.msra.mxu0 %v1808_v23  ;;  %v659_v23 = vld [vmem:[#allocation8 + $0x80] sm:$0xff] }
  0xcd   :  { %1873 = vmatpush1.bf16.msra.mxu1 %v1872_v24  ;;  %1811 = vmatprep.subr.bf16.mxu0 %v1810_v25  ;;  %v667_v24 = vld [vmem:[#allocation8 + $0xc0] sm:$0xff]  ;;  %v661_v25 = vld [vmem:[#allocation8 + $0x90] sm:$0xff] }
  0xce   :  { %1875 = vmatprep.subr.bf16.mxu1 %v1874_v29  ;;  %v684_v29 = vld [vmem:[#allocation8 + $0x148] sm:$0xff]  ;;  %v1896_v33 = vpack.c.bf16 %v667_v24, %v659_v23  ;;  %v1960_v34 = vpack.c.bf16 %v669_v27, %v661_v25  ;;  %v1978_v23 = vpack.c.bf16 %v750_v14, %v742_v13  ;;  %v749_v24 = vld [vmem:[#allocation8 + $0x350] sm:$0xff]  ;;  %v758_v27 = vld [vmem:[#allocation8 + $0x398] sm:$0xff] }
  0xcf   :  { %v756_v25 = vld [vmem:[#allocation8 + $0x388] sm:$0xff] }
  0xd0   :  { %1813 = vmatpush1.bf16.msra.mxu0 %v1812_v35  ;;  %v1898_v35 = vpack.c.bf16 %v684_v29, %v676_v28  ;;  %v766_v28 = vld [vmem:[#allocation8 + $0x3d8] sm:$0xff] }
  0xd1   :  { %1877 = vmatpush1.bf16.msra.mxu1 %v1876_v36  ;;  %1815 = vmatprep.subr.bf16.mxu0 %v1814_v37  ;;  %v675_v36 = vld [vmem:[#allocation8 + $0x100] sm:$0xff] }
  0xd2   :  { %1879 = vmatprep.subr.bf16.mxu1 %v1878_v41  ;;  %v683_v37 = vld [vmem:[#allocation8 + $0x140] sm:$0xff]  ;;  %v692_v41 = vld [vmem:[#allocation8 + $0x188] sm:$0xff] }
  0xd3   :  { %v1902_v46 = vpack.c.bf16 %v700_v42, %v692_v41  ;;  %v782_v41 = vld [vmem:[#allocation8 + $0x458] sm:$0xff] }
  0xd4   :  { %1817 = vmatpush1.bf16.msra.mxu0 %v1816_v47  ;;  %v691_v47 = vld [vmem:[#allocation8 + $0x180] sm:$0xff] }
  0xd5   :  { %1881 = vmatpush1.bf16.msra.mxu1 %v1880_v48  ;;  %1819 = vmatprep.subr.bf16.mxu0 %v1818_v49  ;;  %v699_v48 = vld [vmem:[#allocation8 + $0x1c0] sm:$0xff]  ;;  %v693_v49 = vld [vmem:[#allocation8 + $0x190] sm:$0xff] }
  0xd6   :  { %1883 = vmatprep.subr.bf16.mxu1 %v1882_v53  ;;  %v716_v53 = vld [vmem:[#allocation8 + $0x248] sm:$0xff]  ;;  %v1904_v55 = vpack.c.bf16 %v699_v48, %v691_v47  ;;  %v1968_v56 = vpack.c.bf16 %v701_v51, %v693_v49  ;;  %v1986_v47 = vpack.c.bf16 %v782_v41, %v774_v40  ;;  %v781_v48 = vld [vmem:[#allocation8 + $0x450] sm:$0xff]  ;;  %v790_v51 = vld [vmem:[#allocation8 + $0x498] sm:$0xff] }
  0xd7   :  { %v1906_v57 = vpack.c.bf16 %v716_v53, %v708_v52  ;;  %v788_v49 = vld [vmem:[#allocation8 + $0x488] sm:$0xff]  ;;  %v798_v52 = vld [vmem:[#allocation8 + $0x4d8] sm:$0xff] }
  0xd8   :  { %1821 = vmatpush1.bf16.msra.mxu0 %v1820_v58  ;;  %v707_v58 = vld [vmem:[#allocation8 + $0x200] sm:$0xff] }
  0xd9   :  { %1885 = vmatpush1.bf16.msra.mxu1 %v1884_v59  ;;  %1823 = vmatprep.subr.bf16.mxu0 %v1822_v60  ;;  %v715_v59 = vld [vmem:[#allocation8 + $0x240] sm:$0xff]  ;;  %v709_v60 = vld [vmem:[#allocation8 + $0x210] sm:$0xff] }
  0xda   :  { %1887 = vmatprep.subr.bf16.mxu1 %v1886_v0  ;;  %v732_v0 = vld [vmem:[#allocation8 + $0x2c8] sm:$0xff]  ;;  %v1908_v3 = vpack.c.bf16 %v715_v59, %v707_v58  ;;  %v1972_v4 = vpack.c.bf16 %v717_v62, %v709_v60  ;;  %v1990_v58 = vpack.c.bf16 %v798_v52, %v790_v51  ;;  %v797_v59 = vld [vmem:[#allocation8 + $0x4d0] sm:$0xff]  ;;  %v806_v62 = vld [vmem:[#allocation8 + $0x518] sm:$0xff] }
  0xdb   :  { %v1910_v5 = vpack.c.bf16 %v732_v0, %v724_v63  ;;  %v804_v60 = vld [vmem:[#allocation8 + $0x508] sm:$0xff]  ;;  %v814_v63 = vld [vmem:[#allocation8 + $0x558] sm:$0xff] }
  0xdc   :  { %1825 = vmatpush1.bf16.msra.mxu0 %v1824_v6  ;;  %v723_v6 = vld [vmem:[#allocation8 + $0x280] sm:$0xff] }
  0xdd   :  { %1889 = vmatpush1.bf16.msra.mxu1 %v1888_v7  ;;  %1891 = vmatprep.subr.bf16.mxu0 %v1890_v8  ;;  %v731_v7 = vld [vmem:[#allocation8 + $0x2c0] sm:$0xff]  ;;  %v725_v8 = vld [vmem:[#allocation8 + $0x290] sm:$0xff] }
  0xde   :  { %1955 = vmatprep.subr.bf16.mxu1 %v1954_v12  ;;  %v748_v12 = vld [vmem:[#allocation8 + $0x348] sm:$0xff]  ;;  %v1912_v17 = vpack.c.bf16 %v731_v7, %v723_v6  ;;  %v1976_v18 = vpack.c.bf16 %v733_v10, %v725_v8  ;;  %v1994_v6 = vpack.c.bf16 %v814_v63, %v806_v62  ;;  %v813_v7 = vld [vmem:[#allocation8 + $0x550] sm:$0xff]  ;;  %v822_v10 = vld [vmem:[#allocation8 + $0x598] sm:$0xff] }
  0xdf   :  { %554 = vmatmul.mubr.f32.vlgmr.msra.gmra.mrb[2].mxu0 %v2532_v15  ;;  %v1914_v19 = vpack.c.bf16 %v748_v12, %v740_v11  ;;  %v820_v8 = vld [vmem:[#allocation8 + $0x588] sm:$0xff]  ;;  %v830_v11 = vld [vmem:[#allocation8 + $0x5d8] sm:$0xff] }
  0xe0   :  { %625 = vmatmul.mubr.f32.vlgmr.msra.gmra.mrb[2].mxu1 %v2532_v15  ;;  %1893 = vmatpush1.bf16.msra.mxu0 %v1892_v20  ;;  %v1900_v15 = vpack.c.bf16 %v683_v37, %v675_v36  ;;  %v739_v20 = vld [vmem:[#allocation8 + $0x300] sm:$0xff]  ;;  %v1982_v36 = vpack.c.bf16 %v766_v28, %v758_v27  ;;  %v765_v37 = vld [vmem:[#allocation8 + $0x3d0] sm:$0xff] }
  0xe1   :  { %1957 = vmatpush1.bf16.msra.mxu1 %v1956_v21  ;;  %1895 = vmatprep.subr.bf16.mxu0 %v1894_v22  ;;  %v747_v21 = vld [vmem:[#allocation8 + $0x340] sm:$0xff]  ;;  %v741_v22 = vld [vmem:[#allocation8 + $0x310] sm:$0xff] }
  0xe2   :  { %1959 = vmatprep.subr.bf16.mxu1 %v1958_v26  ;;  %963 = vmatprep.mubr.f32.mxu0 %v2539_v32  ;;  %v764_v26 = vld [vmem:[#allocation8 + $0x3c8] sm:$0xff]  ;;  %v1916_v29 = vpack.c.bf16 %v747_v21, %v739_v20  ;;  %v1980_v30 = vpack.c.bf16 %v749_v24, %v741_v22  ;;  %v1998_v20 = vpack.c.bf16 %v830_v11, %v822_v10  ;;  %v829_v21 = vld [vmem:[#allocation8 + $0x5d0] sm:$0xff]  ;;  %v838_v24 = vld [vmem:[#allocation8 + $0x618] sm:$0xff] }
  0xe3   :  { %1040 = vmatprep.mubr.f32.mxu1 %v2539_v32  ;;  %v1918_v31 = vpack.c.bf16 %v764_v26, %v756_v25  ;;  %v836_v22 = vld [vmem:[#allocation8 + $0x608] sm:$0xff]  ;;  %v846_v25 = vld [vmem:[#allocation8 + $0x658] sm:$0xff] }
  0xe4   :  { %1897 = vmatpush1.bf16.msra.mxu0 %v1896_v33  ;;  %v755_v33 = vld [vmem:[#allocation8 + $0x380] sm:$0xff] }
  0xe5   :  { %1961 = vmatpush1.bf16.msra.mxu1 %v1960_v34  ;;  %1899 = vmatprep.subr.bf16.mxu0 %v1898_v35  ;;  %v763_v34 = vld [vmem:[#allocation8 + $0x3c0] sm:$0xff]  ;;  %v757_v35 = vld [vmem:[#allocation8 + $0x390] sm:$0xff] }
  0xe6   :  { %1963 = vmatprep.subr.bf16.mxu1 %v1962_v39  ;;  %v780_v39 = vld [vmem:[#allocation8 + $0x448] sm:$0xff]  ;;  %v1920_v42 = vpack.c.bf16 %v763_v34, %v755_v33  ;;  %v1984_v43 = vpack.c.bf16 %v765_v37, %v757_v35  ;;  %v2002_v33 = vpack.c.bf16 %v846_v25, %v838_v24  ;;  %v845_v34 = vld [vmem:[#allocation8 + $0x650] sm:$0xff]  ;;  %v854_v37 = vld [vmem:[#allocation8 + $0x698] sm:$0xff] }
  0xe7   :  { %v1922_v44 = vpack.c.bf16 %v780_v39, %v772_v38  ;;  %v852_v35 = vld [vmem:[#allocation8 + $0x688] sm:$0xff]  ;;  %v862_v38 = vld [vmem:[#allocation8 + $0x6d8] sm:$0xff] }
  0xe8   :  { %1901 = vmatpush1.bf16.msra.mxu0 %v1900_v15  ;;  %v771_v15 = vld [vmem:[#allocation8 + $0x400] sm:$0xff] }
  0xe9   :  { %1965 = vmatpush1.bf16.msra.mxu1 %v1964_v45  ;;  %1903 = vmatprep.subr.bf16.mxu0 %v1902_v46  ;;  %v779_v45 = vld [vmem:[#allocation8 + $0x440] sm:$0xff]  ;;  %v773_v46 = vld [vmem:[#allocation8 + $0x410] sm:$0xff] }
  0xea   :  { %1967 = vmatprep.subr.bf16.mxu1 %v1966_v50  ;;  %v796_v50 = vld [vmem:[#allocation8 + $0x4c8] sm:$0xff]  ;;  %v1924_v53 = vpack.c.bf16 %v779_v45, %v771_v15  ;;  %v1988_v16 = vpack.c.bf16 %v781_v48, %v773_v46  ;;  %v2006_v15 = vpack.c.bf16 %v862_v38, %v854_v37  ;;  %v861_v45 = vld [vmem:[#allocation8 + $0x6d0] sm:$0xff]  ;;  %v870_v48 = vld [vmem:[#allocation8 + $0x718] sm:$0xff] }
  0xeb   :  { %v1926_v54 = vpack.c.bf16 %v796_v50, %v788_v49  ;;  %v868_v46 = vld [vmem:[#allocation8 + $0x708] sm:$0xff]  ;;  %v878_v49 = vld [vmem:[#allocation8 + $0x758] sm:$0xff]  ;;  %v2547_v37 = vld [vmem:[#allocation5 + $0x18] sm:$0xff] }
  0xec   :  { %1905 = vmatpush1.bf16.msra.mxu0 %v1904_v55  ;;  %v787_v55 = vld [vmem:[#allocation8 + $0x480] sm:$0xff] }
  0xed   :  { %1969 = vmatpush1.bf16.msra.mxu1 %v1968_v56  ;;  %1907 = vmatprep.subr.bf16.mxu0 %v1906_v57  ;;  %v795_v56 = vld [vmem:[#allocation8 + $0x4c0] sm:$0xff]  ;;  %v789_v57 = vld [vmem:[#allocation8 + $0x490] sm:$0xff] }
  0xee   :  { %1971 = vmatprep.subr.bf16.mxu1 %v1970_v61  ;;  %v812_v61 = vld [vmem:[#allocation8 + $0x548] sm:$0xff]  ;;  %v1928_v0 = vpack.c.bf16 %v795_v56, %v787_v55  ;;  %v1992_v1 = vpack.c.bf16 %v797_v59, %v789_v57  ;;  %v2010_v55 = vpack.c.bf16 %v878_v49, %v870_v48  ;;  %v877_v56 = vld [vmem:[#allocation8 + $0x750] sm:$0xff]  ;;  %v886_v59 = vld [vmem:[#allocation8 + $0x798] sm:$0xff] }
  0xef   :  { %v1930_v2 = vpack.c.bf16 %v812_v61, %v804_v60  ;;  %v884_v57 = vld [vmem:[#allocation8 + $0x788] sm:$0xff]  ;;  %v894_v60 = vld [vmem:[#allocation8 + $0x7d8] sm:$0xff] }
  0xf0   :  { %1909 = vmatpush1.bf16.msra.mxu0 %v1908_v3  ;;  %v803_v3 = vld [vmem:[#allocation8 + $0x500] sm:$0xff]  ;;  %v698_v48 = vld [vmem:[#allocation8 + $0x1b8] sm:$0xff] }
  0xf1   :  { %1973 = vmatpush1.bf16.msra.mxu1 %v1972_v4  ;;  %1911 = vmatprep.subr.bf16.mxu0 %v1910_v5  ;;  %v811_v4 = vld [vmem:[#allocation8 + $0x540] sm:$0xff]  ;;  %v805_v5 = vld [vmem:[#allocation8 + $0x510] sm:$0xff]  ;;  %v706_v49 = vld [vmem:[#allocation8 + $0x1f8] sm:$0xff] }
  0xf2   :  { %1975 = vmatprep.subr.bf16.mxu1 %v1974_v9  ;;  %v828_v9 = vld [vmem:[#allocation8 + $0x5c8] sm:$0xff]  ;;  %v1932_v12 = vpack.c.bf16 %v811_v4, %v803_v3  ;;  %v1996_v13 = vpack.c.bf16 %v813_v7, %v805_v5  ;;  %v2014_v3 = vpack.c.bf16 %v894_v60, %v886_v59  ;;  %v893_v4 = vld [vmem:[#allocation8 + $0x7d0] sm:$0xff]  ;;  %v650_v7 = vld [vmem:[#allocation8 + $0x38] sm:$0xff] }
  0xf3   :  { %v1934_v14 = vpack.c.bf16 %v828_v9, %v820_v8  ;;  %v648_v5 = vld [vmem:[#allocation8 + $0x28] sm:$0xff]  ;;  %v658_v8 = vld [vmem:[#allocation8 + $0x78] sm:$0xff] }
  0xf4   :  { %1913 = vmatpush1.bf16.msra.mxu0 %v1912_v17  ;;  %v819_v17 = vld [vmem:[#allocation8 + $0x580] sm:$0xff]  ;;  %v714_v59 = vld [vmem:[#allocation8 + $0x238] sm:$0xff] }
  0xf5   :  { %1977 = vmatpush1.bf16.msra.mxu1 %v1976_v18  ;;  %1915 = vmatprep.subr.bf16.mxu0 %v1914_v19  ;;  %v827_v18 = vld [vmem:[#allocation8 + $0x5c0] sm:$0xff]  ;;  %v821_v19 = vld [vmem:[#allocation8 + $0x590] sm:$0xff]  ;;  %v722_v60 = vld [vmem:[#allocation8 + $0x278] sm:$0xff] }
  0xf6   :  { %1979 = vmatprep.subr.bf16.mxu1 %v1978_v23  ;;  %v844_v23 = vld [vmem:[#allocation8 + $0x648] sm:$0xff]  ;;  %v1936_v26 = vpack.c.bf16 %v827_v18, %v819_v17  ;;  %v2000_v27 = vpack.c.bf16 %v829_v21, %v821_v19  ;;  %v2082_v17 = vpack.c.bf16 %v658_v8, %v650_v7  ;;  %v657_v18 = vld [vmem:[#allocation8 + $0x70] sm:$0xff]  ;;  %v666_v21 = vld [vmem:[#allocation8 + $0xb8] sm:$0xff] }
  0xf7   :  { %v1938_v28 = vpack.c.bf16 %v844_v23, %v836_v22  ;;  %v664_v19 = vld [vmem:[#allocation8 + $0xa8] sm:$0xff]  ;;  %v674_v22 = vld [vmem:[#allocation8 + $0xf8] sm:$0xff] }
  0xf8   :  { %1917 = vmatpush1.bf16.msra.mxu0 %v1916_v29  ;;  %v835_v29 = vld [vmem:[#allocation8 + $0x600] sm:$0xff]  ;;  %v2544_v23 = vld [vmem:[#allocation5] sm:$0xff] }
  0xf9   :  { %1981 = vmatpush1.bf16.msra.mxu1 %v1980_v30  ;;  %1919 = vmatprep.subr.bf16.mxu0 %v1918_v31  ;;  %v843_v30 = vld [vmem:[#allocation8 + $0x640] sm:$0xff]  ;;  %v837_v31 = vld [vmem:[#allocation8 + $0x610] sm:$0xff]  ;;  %v730_v7 = vld [vmem:[#allocation8 + $0x2b8] sm:$0xff] }
  0xfa   :  { %1983 = vmatprep.subr.bf16.mxu1 %v1982_v36  ;;  %v860_v36 = vld [vmem:[#allocation8 + $0x6c8] sm:$0xff]  ;;  %v1940_v39 = vpack.c.bf16 %v843_v30, %v835_v29  ;;  %v2004_v40 = vpack.c.bf16 %v845_v34, %v837_v31  ;;  %v665_v29 = vld [vmem:[#allocation8 + $0xb0] sm:$0xff]  ;;  %v2086_v30 = vpack.c.bf16 %v674_v22, %v666_v21  ;;  %v738_v8 = vld [vmem:[#allocation8 + $0x2f8] sm:$0xff] }
  0xfb   :  { %v1942_v41 = vpack.c.bf16 %v860_v36, %v852_v35  ;;  %v673_v31 = vld [vmem:[#allocation8 + $0xf0] sm:$0xff]  ;;  %v688_v34 = vld [vmem:[#allocation8 + $0x168] sm:$0xff]  ;;  %v682_v35 = vld [vmem:[#allocation8 + $0x138] sm:$0xff] }
  0xfc   :  { %1921 = vmatpush1.bf16.msra.mxu0 %v1920_v42  ;;  %v851_v42 = vld [vmem:[#allocation8 + $0x680] sm:$0xff]  ;;  %v690_v36 = vld [vmem:[#allocation8 + $0x178] sm:$0xff] }
  0xfd   :  { %1985 = vmatpush1.bf16.msra.mxu1 %v1984_v43  ;;  %1923 = vmatprep.subr.bf16.mxu0 %v1922_v44  ;;  %v859_v43 = vld [vmem:[#allocation8 + $0x6c0] sm:$0xff]  ;;  %v853_v44 = vld [vmem:[#allocation8 + $0x690] sm:$0xff]  ;;  %v754_v21 = vld [vmem:[#allocation8 + $0x378] sm:$0xff] }
  0xfe   :  { %1987 = vmatprep.subr.bf16.mxu1 %v1986_v47  ;;  %v876_v47 = vld [vmem:[#allocation8 + $0x748] sm:$0xff]  ;;  %v1944_v50 = vpack.c.bf16 %v859_v43, %v851_v42  ;;  %v2008_v51 = vpack.c.bf16 %v861_v45, %v853_v44  ;;  %v679_v42 = vld [vmem:[#allocation8 + $0x120] sm:$0xff]  ;;  %v681_v44 = vld [vmem:[#allocation8 + $0x130] sm:$0xff] }
  0xff   :  { %v1946_v52 = vpack.c.bf16 %v876_v47, %v868_v46  ;;  %v687_v43 = vld [vmem:[#allocation8 + $0x160] sm:$0xff]  ;;  %v689_v45 = vld [vmem:[#allocation8 + $0x170] sm:$0xff]  ;;  %v696_v46 = vld [vmem:[#allocation8 + $0x1a8] sm:$0xff] }
 0x100   :  { %1925 = vmatpush1.bf16.msra.mxu0 %v1924_v53  ;;  %v867_v53 = vld [vmem:[#allocation8 + $0x700] sm:$0xff]  ;;  %v704_v47 = vld [vmem:[#allocation8 + $0x1e8] sm:$0xff] }
 0x101   :  { %1989 = vmatpush1.bf16.msra.mxu1 %v1988_v16  ;;  %1927 = vmatprep.subr.bf16.mxu0 %v1926_v54  ;;  %v875_v16 = vld [vmem:[#allocation8 + $0x740] sm:$0xff]  ;;  %v869_v54 = vld [vmem:[#allocation8 + $0x710] sm:$0xff] }
 0x102   :  { %1991 = vmatprep.subr.bf16.mxu1 %v1990_v58  ;;  %v892_v58 = vld [vmem:[#allocation8 + $0x7c8] sm:$0xff]  ;;  %v1948_v61 = vpack.c.bf16 %v875_v16, %v867_v53  ;;  %v2012_v62 = vpack.c.bf16 %v877_v56, %v869_v54  ;;  %v695_v53 = vld [vmem:[#allocation8 + $0x1a0] sm:$0xff]  ;;  %v697_v54 = vld [vmem:[#allocation8 + $0x1b0] sm:$0xff] }
 0x103   :  { %v1950_v63 = vpack.c.bf16 %v892_v58, %v884_v57  ;;  %v703_v16 = vld [vmem:[#allocation8 + $0x1e0] sm:$0xff]  ;;  %v705_v56 = vld [vmem:[#allocation8 + $0x1f0] sm:$0xff]  ;;  %v712_v57 = vld [vmem:[#allocation8 + $0x228] sm:$0xff] }
 0x104   :  { %1929 = vmatpush1.bf16.msra.mxu0 %v1928_v0  ;;  %v883_v0 = vld [vmem:[#allocation8 + $0x780] sm:$0xff]  ;;  %v720_v58 = vld [vmem:[#allocation8 + $0x268] sm:$0xff] }
 0x105   :  { %1993 = vmatpush1.bf16.msra.mxu1 %v1992_v1  ;;  %1931 = vmatprep.subr.bf16.mxu0 %v1930_v2  ;;  %v891_v1 = vld [vmem:[#allocation8 + $0x7c0] sm:$0xff]  ;;  %v885_v2 = vld [vmem:[#allocation8 + $0x790] sm:$0xff] }
 0x106   :  { %1995 = vmatprep.subr.bf16.mxu1 %v1994_v6  ;;  %v656_v6 = vld [vmem:[#allocation8 + $0x68] sm:$0xff]  ;;  %v1952_v9 = vpack.c.bf16 %v891_v1, %v883_v0  ;;  %v2016_v10 = vpack.c.bf16 %v893_v4, %v885_v2  ;;  %v711_v0 = vld [vmem:[#allocation8 + $0x220] sm:$0xff]  ;;  %v713_v2 = vld [vmem:[#allocation8 + $0x230] sm:$0xff] }
 0x107   :  { %v2018_v11 = vpack.c.bf16 %v656_v6, %v648_v5  ;;  %v719_v1 = vld [vmem:[#allocation8 + $0x260] sm:$0xff]  ;;  %v721_v4 = vld [vmem:[#allocation8 + $0x270] sm:$0xff]  ;;  %v728_v5 = vld [vmem:[#allocation8 + $0x2a8] sm:$0xff] }
 0x108   :  { %1933 = vmatpush1.bf16.msra.mxu0 %v1932_v12  ;;  %v647_v12 = vld [vmem:[#allocation8 + $0x20] sm:$0xff]  ;;  %v736_v6 = vld [vmem:[#allocation8 + $0x2e8] sm:$0xff] }
 0x109   :  { %1997 = vmatpush1.bf16.msra.mxu1 %v1996_v13  ;;  %1935 = vmatprep.subr.bf16.mxu0 %v1934_v14  ;;  %v655_v13 = vld [vmem:[#allocation8 + $0x60] sm:$0xff]  ;;  %v649_v14 = vld [vmem:[#allocation8 + $0x30] sm:$0xff] }
 0x10a   :  { %1999 = vmatprep.subr.bf16.mxu1 %v1998_v20  ;;  %v672_v20 = vld [vmem:[#allocation8 + $0xe8] sm:$0xff]  ;;  %v2020_v24 = vpack.c.bf16 %v655_v13, %v647_v12  ;;  %v2084_v25 = vpack.c.bf16 %v657_v18, %v649_v14  ;;  %v735_v12 = vld [vmem:[#allocation8 + $0x2e0] sm:$0xff]  ;;  %v729_v13 = vld [vmem:[#allocation8 + $0x2b0] sm:$0xff]  ;;  %v2102_v14 = vpack.c.bf16 %v738_v8, %v730_v7 }
 0x10b   :  { %v744_v18 = vld [vmem:[#allocation8 + $0x328] sm:$0xff]  ;;  %v818_v7 = vld [vmem:[#allocation8 + $0x578] sm:$0xff] }
 0x10c   :  { %1937 = vmatpush1.bf16.msra.mxu0 %v1936_v26  ;;  %v2022_v26 = vpack.c.bf16 %v672_v20, %v664_v19  ;;  %v752_v19 = vld [vmem:[#allocation8 + $0x368] sm:$0xff]  ;;  %v746_v20 = vld [vmem:[#allocation8 + $0x338] sm:$0xff] }
 0x10d   :  { %2001 = vmatpush1.bf16.msra.mxu1 %v2000_v27  ;;  %1939 = vmatprep.subr.bf16.mxu0 %v1938_v28  ;;  %v663_v27 = vld [vmem:[#allocation8 + $0xa0] sm:$0xff] }
 0x10e   :  { %2003 = vmatprep.subr.bf16.mxu1 %v2002_v33  ;;  %v671_v28 = vld [vmem:[#allocation8 + $0xe0] sm:$0xff]  ;;  %v680_v33 = vld [vmem:[#allocation8 + $0x128] sm:$0xff] }
 0x10f   :  { %v2024_v38 = vpack.c.bf16 %v671_v28, %v663_v27  ;;  %v751_v27 = vld [vmem:[#allocation8 + $0x360] sm:$0xff]  ;;  %v745_v28 = vld [vmem:[#allocation8 + $0x330] sm:$0xff] }
 0x110   :  { %1941 = vmatpush1.bf16.msra.mxu0 %v1940_v39  ;;  %v2550_v39 = vld [vmem:[#allocation5 + $0x10] sm:$0xff] }
 0x111   :  { %2005 = vmatpush1.bf16.msra.mxu1 %v2004_v40  ;;  %1943 = vmatprep.subr.bf16.mxu0 %v1942_v41  ;;  %v2088_v40 = vpack.c.bf16 %v673_v31, %v665_v29  ;;  %v2026_v41 = vpack.c.bf16 %v688_v34, %v680_v33  ;;  %v2106_v29 = vpack.c.bf16 %v754_v21, %v746_v20  ;;  %v760_v31 = vld [vmem:[#allocation8 + $0x3a8] sm:$0xff]  ;;  %v762_v34 = vld [vmem:[#allocation8 + $0x3b8] sm:$0xff] }
 0x112   :  { %2007 = vmatprep.subr.bf16.mxu1 %v2006_v15  ;;  %v2090_v15 = vpack.c.bf16 %v690_v36, %v682_v35  ;;  %v768_v33 = vld [vmem:[#allocation8 + $0x3e8] sm:$0xff]  ;;  %v770_v35 = vld [vmem:[#allocation8 + $0x3f8] sm:$0xff] }
 0x113   :  { %v834_v20 = vld [vmem:[#allocation8 + $0x5f8] sm:$0xff] }
 0x114   :  { %1945 = vmatpush1.bf16.msra.mxu0 %v1944_v50  ;;  %v2028_v50 = vpack.c.bf16 %v687_v43, %v679_v42  ;;  %v767_v42 = vld [vmem:[#allocation8 + $0x3e0] sm:$0xff]  ;;  %v761_v43 = vld [vmem:[#allocation8 + $0x3b0] sm:$0xff] }
 0x115   :  { %2009 = vmatpush1.bf16.msra.mxu1 %v2008_v51  ;;  %1947 = vmatprep.subr.bf16.mxu0 %v1946_v52  ;;  %v2092_v51 = vpack.c.bf16 %v689_v45, %v681_v44  ;;  %v2030_v52 = vpack.c.bf16 %v704_v47, %v696_v46  ;;  %v2110_v44 = vpack.c.bf16 %v770_v35, %v762_v34  ;;  %v776_v45 = vld [vmem:[#allocation8 + $0x428] sm:$0xff]  ;;  %v778_v47 = vld [vmem:[#allocation8 + $0x438] sm:$0xff] }
 0x116   :  { %2011 = vmatprep.subr.bf16.mxu1 %v2010_v55  ;;  %v2094_v55 = vpack.c.bf16 %v706_v49, %v698_v48  ;;  %v784_v46 = vld [vmem:[#allocation8 + $0x468] sm:$0xff]  ;;  %v786_v48 = vld [vmem:[#allocation8 + $0x478] sm:$0xff] }
 0x117   :  { %v850_v34 = vld [vmem:[#allocation8 + $0x678] sm:$0xff] }
 0x118   :  { %1949 = vmatpush1.bf16.msra.mxu0 %v1948_v61  ;;  %v2032_v61 = vpack.c.bf16 %v703_v16, %v695_v53  ;;  %v783_v53 = vld [vmem:[#allocation8 + $0x460] sm:$0xff]  ;;  %v777_v16 = vld [vmem:[#allocation8 + $0x430] sm:$0xff] }
 0x119   :  { %2013 = vmatpush1.bf16.msra.mxu1 %v2012_v62  ;;  %1951 = vmatprep.subr.bf16.mxu0 %v1950_v63  ;;  %v2096_v62 = vpack.c.bf16 %v705_v56, %v697_v54  ;;  %v2034_v63 = vpack.c.bf16 %v720_v58, %v712_v57  ;;  %v2114_v54 = vpack.c.bf16 %v786_v48, %v778_v47  ;;  %v792_v56 = vld [vmem:[#allocation8 + $0x4a8] sm:$0xff]  ;;  %v794_v58 = vld [vmem:[#allocation8 + $0x4b8] sm:$0xff] }
 0x11a   :  { %2015 = vmatprep.subr.bf16.mxu1 %v2014_v3  ;;  %v2098_v3 = vpack.c.bf16 %v722_v60, %v714_v59  ;;  %v800_v57 = vld [vmem:[#allocation8 + $0x4e8] sm:$0xff]  ;;  %v802_v59 = vld [vmem:[#allocation8 + $0x4f8] sm:$0xff] }
 0x11b   :  { %v866_v47 = vld [vmem:[#allocation8 + $0x6f8] sm:$0xff] }
 0x11c   :  { %1953 = vmatpush1.bf16.msra.mxu0 %v1952_v9  ;;  %v2036_v9 = vpack.c.bf16 %v719_v1, %v711_v0  ;;  %v799_v0 = vld [vmem:[#allocation8 + $0x4e0] sm:$0xff]  ;;  %v793_v1 = vld [vmem:[#allocation8 + $0x4b0] sm:$0xff] }
 0x11d   :  { %2017 = vmatpush1.bf16.msra.mxu1 %v2016_v10  ;;  %2019 = vmatprep.subr.bf16.mxu0 %v2018_v11  ;;  %v2038_v10 = vpack.c.bf16 %v736_v6, %v728_v5  ;;  %v727_v11 = vld [vmem:[#allocation8 + $0x2a0] sm:$0xff]  ;;  %v816_v5 = vld [vmem:[#allocation8 + $0x568] sm:$0xff]  ;;  %v810_v6 = vld [vmem:[#allocation8 + $0x538] sm:$0xff] }
 0x11e   :  { %2083 = vmatprep.subr.bf16.mxu1 %v2082_v17  ;;  %v737_v17 = vld [vmem:[#allocation8 + $0x2f0] sm:$0xff]  ;;  %v2040_v22 = vpack.c.bf16 %v735_v12, %v727_v11  ;;  %v815_v11 = vld [vmem:[#allocation8 + $0x560] sm:$0xff] }
 0x11f   :  { %964 = vmatmul.mubr.f32.vlgmr.msra.gmra.mrb[4].mxu0 %v2544_v23  ;;  %v809_v12 = vld [vmem:[#allocation8 + $0x530] sm:$0xff] }
 0x120   :  { %1041 = vmatmul.mubr.f32.vlgmr.msra.gmra.mrb[4].mxu1 %v2544_v23  ;;  %2021 = vmatpush1.bf16.msra.mxu0 %v2020_v24  ;;  %v2104_v24 = vpack.c.bf16 %v737_v17, %v729_v13  ;;  %v2122_v13 = vpack.c.bf16 %v818_v7, %v810_v6  ;;  %v824_v17 = vld [vmem:[#allocation8 + $0x5a8] sm:$0xff]  ;;  %v898_v6 = vld [vmem:[#allocation8 + $0x7f8] sm:$0xff] }
 0x121   :  { %2085 = vmatpush1.bf16.msra.mxu1 %v2084_v25  ;;  %2023 = vmatprep.subr.bf16.mxu0 %v2022_v26  ;;  %v2042_v25 = vpack.c.bf16 %v752_v19, %v744_v18  ;;  %v743_v26 = vld [vmem:[#allocation8 + $0x320] sm:$0xff]  ;;  %v832_v18 = vld [vmem:[#allocation8 + $0x5e8] sm:$0xff]  ;;  %v826_v19 = vld [vmem:[#allocation8 + $0x5b8] sm:$0xff] }
 0x122   :  { %2087 = vmatprep.subr.bf16.mxu1 %v2086_v30  ;;  %969 = vmatprep.mubr.f32.mxu0 %v2547_v37  ;;  %v753_v30 = vld [vmem:[#allocation8 + $0x370] sm:$0xff]  ;;  %v2044_v36 = vpack.c.bf16 %v751_v27, %v743_v26  ;;  %v831_v26 = vld [vmem:[#allocation8 + $0x5e0] sm:$0xff] }
 0x123   :  { %1046 = vmatprep.mubr.f32.mxu1 %v2547_v37  ;;  %970 = vmatmul.mubr.f32.gmra.mrb[6].mxu0 %v2550_v39  ;;  %v825_v27 = vld [vmem:[#allocation8 + $0x5b0] sm:$0xff] }
 0x124   :  { %2025 = vmatpush1.bf16.msra.mxu0 %v2024_v38  ;;  %1047 = vmatmul.mubr.f32.gmra.mrb[6].mxu1 %v2550_v39  ;;  %v2108_v38 = vpack.c.bf16 %v753_v30, %v745_v28  ;;  %v2126_v28 = vpack.c.bf16 %v834_v20, %v826_v19  ;;  %v840_v30 = vld [vmem:[#allocation8 + $0x628] sm:$0xff]  ;;  %v1235_v19 = vld [vmem:[#allocation10 + $0x58] sm:$0xff] }
 0x125   :  { %2089 = vmatpush1.bf16.msra.mxu1 %v2088_v40  ;;  %2027 = vmatprep.subr.bf16.mxu0 %v2026_v41  ;;  %v2046_v40 = vpack.c.bf16 %v768_v33, %v760_v31  ;;  %v759_v41 = vld [vmem:[#allocation8 + $0x3a0] sm:$0xff]  ;;  %v848_v31 = vld [vmem:[#allocation8 + $0x668] sm:$0xff]  ;;  %v842_v33 = vld [vmem:[#allocation8 + $0x638] sm:$0xff] }
 0x126   :  { %2091 = vmatprep.subr.bf16.mxu1 %v2090_v15  ;;  %1117 = vmatprep.mubr.f32.mxu0 %v2539_v32  ;;  %v769_v15 = vld [vmem:[#allocation8 + $0x3f0] sm:$0xff]  ;;  %v2048_v49 = vpack.c.bf16 %v767_v42, %v759_v41  ;;  %v847_v41 = vld [vmem:[#allocation8 + $0x660] sm:$0xff] }
 0x127   :  { %1194 = vmatprep.mubr.f32.mxu1 %v2539_v32  ;;  %v2100_v32 = vpack.c.bf16 %v721_v4, %v713_v2  ;;  %v2118_v2 = vpack.c.bf16 %v802_v59, %v794_v58  ;;  %v808_v4 = vld [vmem:[#allocation8 + $0x528] sm:$0xff]  ;;  %v841_v42 = vld [vmem:[#allocation8 + $0x630] sm:$0xff]  ;;  %v882_v58 = vld [vmem:[#allocation8 + $0x778] sm:$0xff] }
 0x128   :  { %2029 = vmatpush1.bf16.msra.mxu0 %v2028_v50  ;;  %v2112_v50 = vpack.c.bf16 %v769_v15, %v761_v43  ;;  %v2130_v43 = vpack.c.bf16 %v850_v34, %v842_v33  ;;  %v856_v15 = vld [vmem:[#allocation8 + $0x6a8] sm:$0xff]  ;;  %v1251_v33 = vld [vmem:[#allocation10 + $0xd8] sm:$0xff] }
 0x129   :  { %2093 = vmatpush1.bf16.msra.mxu1 %v2092_v51  ;;  %2031 = vmatprep.subr.bf16.mxu0 %v2030_v52  ;;  %v2050_v51 = vpack.c.bf16 %v784_v46, %v776_v45  ;;  %v775_v52 = vld [vmem:[#allocation8 + $0x420] sm:$0xff]  ;;  %v864_v45 = vld [vmem:[#allocation8 + $0x6e8] sm:$0xff]  ;;  %v858_v46 = vld [vmem:[#allocation8 + $0x6b8] sm:$0xff] }
 0x12a   :  { %2095 = vmatprep.subr.bf16.mxu1 %v2094_v55  ;;  %v785_v55 = vld [vmem:[#allocation8 + $0x470] sm:$0xff]  ;;  %v2052_v60 = vpack.c.bf16 %v783_v53, %v775_v52  ;;  %v863_v52 = vld [vmem:[#allocation8 + $0x6e0] sm:$0xff] }
 0x12b   :  { %v857_v53 = vld [vmem:[#allocation8 + $0x6b0] sm:$0xff] }
 0x12c   :  { %2033 = vmatpush1.bf16.msra.mxu0 %v2032_v61  ;;  %v2116_v61 = vpack.c.bf16 %v785_v55, %v777_v16  ;;  %v2134_v16 = vpack.c.bf16 %v866_v47, %v858_v46  ;;  %v872_v55 = vld [vmem:[#allocation8 + $0x728] sm:$0xff]  ;;  %v1267_v46 = vld [vmem:[#allocation10 + $0x158] sm:$0xff] }
 0x12d   :  { %2097 = vmatpush1.bf16.msra.mxu1 %v2096_v62  ;;  %2035 = vmatprep.subr.bf16.mxu0 %v2034_v63  ;;  %v2054_v62 = vpack.c.bf16 %v800_v57, %v792_v56  ;;  %v791_v63 = vld [vmem:[#allocation8 + $0x4a0] sm:$0xff]  ;;  %v880_v56 = vld [vmem:[#allocation8 + $0x768] sm:$0xff]  ;;  %v874_v57 = vld [vmem:[#allocation8 + $0x738] sm:$0xff] }
 0x12e   :  { %2099 = vmatprep.subr.bf16.mxu1 %v2098_v3  ;;  %v801_v3 = vld [vmem:[#allocation8 + $0x4f0] sm:$0xff]  ;;  %v2056_v8 = vpack.c.bf16 %v799_v0, %v791_v63  ;;  %v879_v63 = vld [vmem:[#allocation8 + $0x760] sm:$0xff] }
 0x12f   :  { %v873_v0 = vld [vmem:[#allocation8 + $0x730] sm:$0xff] }
 0x130   :  { %2037 = vmatpush1.bf16.msra.mxu0 %v2036_v9  ;;  %v2120_v9 = vpack.c.bf16 %v801_v3, %v793_v1  ;;  %v2138_v1 = vpack.c.bf16 %v882_v58, %v874_v57  ;;  %v888_v3 = vld [vmem:[#allocation8 + $0x7a8] sm:$0xff] }
 0x131   :  { %2101 = vmatpush1.bf16.msra.mxu1 %v2100_v32  ;;  %2039 = vmatprep.subr.bf16.mxu0 %v2038_v10  ;;  %v2058_v32 = vpack.c.bf16 %v816_v5, %v808_v4  ;;  %v807_v10 = vld [vmem:[#allocation8 + $0x520] sm:$0xff]  ;;  %v896_v4 = vld [vmem:[#allocation8 + $0x7e8] sm:$0xff]  ;;  %v890_v5 = vld [vmem:[#allocation8 + $0x7b8] sm:$0xff] }
 0x132   :  { %2103 = vmatprep.subr.bf16.mxu1 %v2102_v14  ;;  %v817_v14 = vld [vmem:[#allocation8 + $0x570] sm:$0xff]  ;;  %v2060_v21 = vpack.c.bf16 %v815_v11, %v807_v10  ;;  %v895_v10 = vld [vmem:[#allocation8 + $0x7e0] sm:$0xff] }
 0x133   :  { %v889_v11 = vld [vmem:[#allocation8 + $0x7b0] sm:$0xff] }
 0x134   :  { %2041 = vmatpush1.bf16.msra.mxu0 %v2040_v22  ;;  %v2124_v22 = vpack.c.bf16 %v817_v14, %v809_v12  ;;  %v2142_v12 = vpack.c.bf16 %v898_v6, %v890_v5  ;;  %v1225_v14 = vld [vmem:[#allocation10 + $0x8] sm:$0xff] }
 0x135   :  { %2105 = vmatpush1.bf16.msra.mxu1 %v2104_v24  ;;  %2043 = vmatprep.subr.bf16.mxu0 %v2042_v25  ;;  %v2062_v24 = vpack.c.bf16 %v832_v18, %v824_v17  ;;  %v823_v25 = vld [vmem:[#allocation8 + $0x5a0] sm:$0xff]  ;;  %v1233_v17 = vld [vmem:[#allocation10 + $0x48] sm:$0xff]  ;;  %v1227_v18 = vld [vmem:[#allocation10 + $0x18] sm:$0xff] }
 0x136   :  { %2107 = vmatprep.subr.bf16.mxu1 %v2106_v29  ;;  %v833_v29 = vld [vmem:[#allocation8 + $0x5f0] sm:$0xff]  ;;  %v2064_v35 = vpack.c.bf16 %v831_v26, %v823_v25  ;;  %v1232_v25 = vld [vmem:[#allocation10 + $0x40] sm:$0xff] }
 0x137   :  { %v1226_v26 = vld [vmem:[#allocation10 + $0x10] sm:$0xff] }
 0x138   :  { %2045 = vmatpush1.bf16.msra.mxu0 %v2044_v36  ;;  %v2128_v36 = vpack.c.bf16 %v833_v29, %v825_v27  ;;  %v2162_v27 = vpack.c.bf16 %v1235_v19, %v1227_v18  ;;  %v1241_v29 = vld [vmem:[#allocation10 + $0x88] sm:$0xff] }
 0x139   :  { %2109 = vmatpush1.bf16.msra.mxu1 %v2108_v38  ;;  %2047 = vmatprep.subr.bf16.mxu0 %v2046_v40  ;;  %v2066_v38 = vpack.c.bf16 %v848_v31, %v840_v30  ;;  %v839_v40 = vld [vmem:[#allocation8 + $0x620] sm:$0xff]  ;;  %v1249_v30 = vld [vmem:[#allocation10 + $0xc8] sm:$0xff]  ;;  %v1243_v31 = vld [vmem:[#allocation10 + $0x98] sm:$0xff] }
 0x13a   :  { %2111 = vmatprep.subr.bf16.mxu1 %v2110_v44  ;;  %v849_v44 = vld [vmem:[#allocation8 + $0x670] sm:$0xff]  ;;  %v2068_v48 = vpack.c.bf16 %v847_v41, %v839_v40  ;;  %v1248_v40 = vld [vmem:[#allocation10 + $0xc0] sm:$0xff] }
 0x13b   :  { %v1242_v41 = vld [vmem:[#allocation10 + $0x90] sm:$0xff] }
 0x13c   :  { %2049 = vmatpush1.bf16.msra.mxu0 %v2048_v49  ;;  %v2132_v49 = vpack.c.bf16 %v849_v44, %v841_v42  ;;  %v2166_v42 = vpack.c.bf16 %v1251_v33, %v1243_v31  ;;  %v1257_v44 = vld [vmem:[#allocation10 + $0x108] sm:$0xff] }
 0x13d   :  { %2113 = vmatpush1.bf16.msra.mxu1 %v2112_v50  ;;  %2051 = vmatprep.subr.bf16.mxu0 %v2050_v51  ;;  %v2070_v50 = vpack.c.bf16 %v864_v45, %v856_v15  ;;  %v855_v51 = vld [vmem:[#allocation8 + $0x6a0] sm:$0xff]  ;;  %v1265_v15 = vld [vmem:[#allocation10 + $0x148] sm:$0xff]  ;;  %v1259_v45 = vld [vmem:[#allocation10 + $0x118] sm:$0xff] }
 0x13e   :  { %2115 = vmatprep.subr.bf16.mxu1 %v2114_v54  ;;  %v865_v54 = vld [vmem:[#allocation8 + $0x6f0] sm:$0xff]  ;;  %v2072_v59 = vpack.c.bf16 %v863_v52, %v855_v51  ;;  %v1264_v51 = vld [vmem:[#allocation10 + $0x140] sm:$0xff] }
 0x13f   :  { %v1258_v52 = vld [vmem:[#allocation10 + $0x110] sm:$0xff] }
 0x140   :  { %2053 = vmatpush1.bf16.msra.mxu0 %v2052_v60  ;;  %v2136_v60 = vpack.c.bf16 %v865_v54, %v857_v53  ;;  %v2170_v53 = vpack.c.bf16 %v1267_v46, %v1259_v45  ;;  %v1273_v54 = vld [vmem:[#allocation10 + $0x188] sm:$0xff]  ;;  %v1279_v46 = vld [vmem:[#allocation10 + $0x1b8] sm:$0xff] }
 0x141   :  { %2117 = vmatpush1.bf16.msra.mxu1 %v2116_v61  ;;  %2055 = vmatprep.subr.bf16.mxu0 %v2054_v62  ;;  %v2074_v61 = vpack.c.bf16 %v880_v56, %v872_v55  ;;  %v871_v62 = vld [vmem:[#allocation8 + $0x720] sm:$0xff]  ;;  %v1281_v55 = vld [vmem:[#allocation10 + $0x1c8] sm:$0xff]  ;;  %v1283_v56 = vld [vmem:[#allocation10 + $0x1d8] sm:$0xff] }
 0x142   :  { %2119 = vmatprep.subr.bf16.mxu1 %v2118_v2  ;;  %v881_v2 = vld [vmem:[#allocation8 + $0x770] sm:$0xff]  ;;  %v2076_v7 = vpack.c.bf16 %v879_v63, %v871_v62 }
 0x143   :  { %v1274_v62 = vld [vmem:[#allocation10 + $0x190] sm:$0xff] }
 0x144   :  { %2057 = vmatpush1.bf16.msra.mxu0 %v2056_v8  ;;  %v2140_v8 = vpack.c.bf16 %v881_v2, %v873_v0  ;;  %v1282_v0 = vld [vmem:[#allocation10 + $0x1d0] sm:$0xff]  ;;  %v1237_v2 = vld [vmem:[#allocation10 + $0x68] sm:$0xff] }
 0x145   :  { %2121 = vmatpush1.bf16.msra.mxu1 %v2120_v9  ;;  %2059 = vmatprep.subr.bf16.mxu0 %v2058_v32  ;;  %v2078_v9 = vpack.c.bf16 %v896_v4, %v888_v3  ;;  %v887_v32 = vld [vmem:[#allocation8 + $0x7a0] sm:$0xff]  ;;  %v1231_v3 = vld [vmem:[#allocation10 + $0x38] sm:$0xff]  ;;  %v2176_v5 = vpack.c.bf16 %v1282_v0, %v1274_v62 }
 0x146   :  { %2123 = vmatprep.subr.bf16.mxu1 %v2122_v13  ;;  %v897_v13 = vld [vmem:[#allocation8 + $0x7f0] sm:$0xff]  ;;  %v2080_v20 = vpack.c.bf16 %v895_v10, %v887_v32  ;;  %v1239_v4 = vld [vmem:[#allocation10 + $0x78] sm:$0xff] }
 0x147   :  { %v2194_v32 = vpack.c.bf16 %v1239_v4, %v1231_v3  ;;  %v1238_v10 = vld [vmem:[#allocation10 + $0x70] sm:$0xff] }
 0x148   :  { %2061 = vmatpush1.bf16.msra.mxu0 %v2060_v21  ;;  %v2144_v21 = vpack.c.bf16 %v897_v13, %v889_v11  ;;  %v1245_v11 = vld [vmem:[#allocation10 + $0xa8] sm:$0xff]  ;;  %v1247_v13 = vld [vmem:[#allocation10 + $0xb8] sm:$0xff] }
 0x149   :  { %2125 = vmatpush1.bf16.msra.mxu1 %v2124_v22  ;;  %2063 = vmatprep.subr.bf16.mxu0 %v2062_v24  ;;  %v2146_v22 = vpack.c.bf16 %v1233_v17, %v1225_v14  ;;  %v1224_v24 = vld [vmem:[#allocation10] sm:$0xff]  ;;  %v1255_v14 = vld [vmem:[#allocation10 + $0xf8] sm:$0xff] }
 0x14a   :  { %2127 = vmatprep.subr.bf16.mxu1 %v2126_v28  ;;  %v1234_v28 = vld [vmem:[#allocation10 + $0x50] sm:$0xff]  ;;  %v2148_v34 = vpack.c.bf16 %v1232_v25, %v1224_v24  ;;  %v2566_v17 = vld [vmem:[#allocation7] sm:$0xff]  ;;  %v2198_v25 = vpack.c.bf16 %v1255_v14, %v1247_v13 }
 0x14b   :  { %v1246_v24 = vld [vmem:[#allocation10 + $0xb0] sm:$0xff] }
 0x14c   :  { %2065 = vmatpush1.bf16.msra.mxu0 %v2064_v35  ;;  %v2164_v35 = vpack.c.bf16 %v1234_v28, %v1226_v26  ;;  %v1254_v26 = vld [vmem:[#allocation10 + $0xf0] sm:$0xff]  ;;  %v1269_v28 = vld [vmem:[#allocation10 + $0x168] sm:$0xff] }
 0x14d   :  { %2129 = vmatpush1.bf16.msra.mxu1 %v2128_v36  ;;  %2067 = vmatprep.subr.bf16.mxu0 %v2066_v38  ;;  %v2150_v36 = vpack.c.bf16 %v1249_v30, %v1241_v29  ;;  %v1240_v38 = vld [vmem:[#allocation10 + $0x80] sm:$0xff]  ;;  %v1263_v29 = vld [vmem:[#allocation10 + $0x138] sm:$0xff]  ;;  %v2200_v33 = vpack.c.bf16 %v1254_v26, %v1246_v24 }
 0x14e   :  { %2131 = vmatprep.subr.bf16.mxu1 %v2130_v43  ;;  %v1250_v43 = vld [vmem:[#allocation10 + $0xd0] sm:$0xff]  ;;  %v2152_v47 = vpack.c.bf16 %v1248_v40, %v1240_v38  ;;  %v1271_v30 = vld [vmem:[#allocation10 + $0x178] sm:$0xff] }
 0x14f   :  { %v1262_v38 = vld [vmem:[#allocation10 + $0x130] sm:$0xff] }
 0x150   :  { %2069 = vmatpush1.bf16.msra.mxu0 %v2068_v48  ;;  %v2168_v48 = vpack.c.bf16 %v1250_v43, %v1242_v41  ;;  %v2202_v41 = vpack.c.bf16 %v1271_v30, %v1263_v29  ;;  %v1277_v43 = vld [vmem:[#allocation10 + $0x1a8] sm:$0xff] }
 0x151   :  { %2133 = vmatpush1.bf16.msra.mxu1 %v2132_v49  ;;  %2071 = vmatprep.subr.bf16.mxu0 %v2070_v50  ;;  %v2154_v49 = vpack.c.bf16 %v1265_v15, %v1257_v44  ;;  %v1256_v50 = vld [vmem:[#allocation10 + $0x100] sm:$0xff]  ;;  %v1285_v44 = vld [vmem:[#allocation10 + $0x1e8] sm:$0xff] }
 0x152   :  { %2135 = vmatprep.subr.bf16.mxu1 %v2134_v16  ;;  %v1266_v16 = vld [vmem:[#allocation10 + $0x150] sm:$0xff]  ;;  %v2156_v57 = vpack.c.bf16 %v1264_v51, %v1256_v50  ;;  %v2190_v51 = vpack.c.bf16 %v1285_v44, %v1277_v43 }
 0x153   :  { %v2172_v58 = vpack.c.bf16 %v1266_v16, %v1258_v52  ;;  %v1276_v52 = vld [vmem:[#allocation10 + $0x1a0] sm:$0xff] }
 0x154   :  { %2073 = vmatpush1.bf16.msra.mxu0 %v2072_v59  ;;  %v2158_v59 = vpack.c.bf16 %v1281_v55, %v1273_v54  ;;  %v1278_v54 = vld [vmem:[#allocation10 + $0x1b0] sm:$0xff] }
 0x155   :  { %2137 = vmatpush1.bf16.msra.mxu1 %v2136_v60  ;;  %2075 = vmatprep.subr.bf16.mxu0 %v2074_v61  ;;  %v1272_v60 = vld [vmem:[#allocation10 + $0x180] sm:$0xff]  ;;  %v1286_v55 = vld [vmem:[#allocation10 + $0x1f0] sm:$0xff] }
 0x156   :  { %2139 = vmatprep.subr.bf16.mxu1 %v2138_v1  ;;  %v1280_v61 = vld [vmem:[#allocation10 + $0x1c0] sm:$0xff]  ;;  %v2418_v1 = vmov 0.0  }
 0x158   :  { %2077 = vmatpush1.bf16.msra.mxu0 %v2076_v7  ;;  %v1228_v7 = vld [vmem:[#allocation10 + $0x20] sm:$0xff] }
 0x159   :  { %2141 = vmatpush1.bf16.msra.mxu1 %v2140_v8  ;;  %2079 = vmatprep.subr.bf16.mxu0 %v2078_v9  ;;  %v1236_v8 = vld [vmem:[#allocation10 + $0x60] sm:$0xff]  ;;  %v1230_v9 = vld [vmem:[#allocation10 + $0x30] sm:$0xff] }
 0x15a   :  { %2143 = vmatprep.subr.bf16.mxu1 %v2142_v12  ;;  %v1253_v12 = vld [vmem:[#allocation10 + $0xe8] sm:$0xff]  ;;  %v2180_v18 = vpack.c.bf16 %v1236_v8, %v1228_v7  ;;  %v2196_v19 = vpack.c.bf16 %v1238_v10, %v1230_v9 }
 0x15c   :  { %2081 = vmatpush1.bf16.msra.mxu0 %v2080_v20  ;;  %v2182_v20 = vpack.c.bf16 %v1253_v12, %v1245_v11 }
 0x15d   :  { %2145 = vmatpush1.bf16.msra.mxu1 %v2144_v21  ;;  %2147 = vmatprep.subr.bf16.mxu0 %v2146_v22  ;;  %v1244_v21 = vld [vmem:[#allocation10 + $0xa0] sm:$0xff] }
 0x15e   :  { %2163 = vmatprep.subr.bf16.mxu1 %v2162_v27  ;;  %v1252_v22 = vld [vmem:[#allocation10 + $0xe0] sm:$0xff]  ;;  %v1261_v27 = vld [vmem:[#allocation10 + $0x128] sm:$0xff] }
 0x15f   :  { %1118 = vmatmul.mubr.f32.vlgmr.msra.gmra.mrb[8].mxu0 %v2544_v23  ;;  %v2184_v31 = vpack.c.bf16 %v1252_v22, %v1244_v21 }
 0x160   :  { %1195 = vmatmul.mubr.f32.vlgmr.msra.gmra.mrb[8].mxu1 %v2544_v23  ;;  %2149 = vmatpush1.bf16.msra.mxu0 %v2148_v34  ;;  %v1275_v23 = vld [vmem:[#allocation10 + $0x198] sm:$0xff]  ;;  %v2186_v34 = vpack.c.bf16 %v1269_v28, %v1261_v27 }
 0x161   :  { %2165 = vmatpush1.bf16.msra.mxu1 %v2164_v35  ;;  %2151 = vmatprep.subr.bf16.mxu0 %v2150_v36  ;;  %v2174_v63 = vpack.c.bf16 %v1283_v56, %v1275_v23  ;;  %v1260_v35 = vld [vmem:[#allocation10 + $0x120] sm:$0xff]  ;;  %v2208_v56 = vpack.c.bf16 %v1286_v55, %v1278_v54 }
 0x162   :  { %2167 = vmatprep.subr.bf16.mxu1 %v2166_v42  ;;  %1123 = vmatprep.mubr.f32.mxu0 %v2547_v37  ;;  %v1268_v36 = vld [vmem:[#allocation10 + $0x160] sm:$0xff]  ;;  %v1270_v42 = vld [vmem:[#allocation10 + $0x170] sm:$0xff] }
 0x163   :  { %1200 = vmatprep.mubr.f32.mxu1 %v2547_v37  ;;  %1124 = vmatmul.mubr.f32.gmra.mrb[10].mxu0 %v2550_v39  ;;  %v1229_v37 = vld [vmem:[#allocation10 + $0x28] sm:$0xff]  ;;  %v2204_v50 = vpack.c.bf16 %v1270_v42, %v1262_v38 }
 0x164   :  { %2153 = vmatpush1.bf16.msra.mxu0 %v2152_v47  ;;  %1201 = vmatmul.mubr.f32.gmra.mrb[10].mxu1 %v2550_v39  ;;  %v2160_v39 = vpack.c.bf16 %v1280_v61, %v1272_v60  ;;  %v2178_v6 = vpack.c.bf16 %v1237_v2, %v1229_v37  ;;  %v1287_v47 = vld [vmem:[#allocation10 + $0x1f8] sm:$0xff] }
 0x165   :  { %2169 = vmatpush1.bf16.msra.mxu1 %v2168_v48  ;;  %2155 = vmatprep.subr.bf16.mxu0 %v2154_v49  ;;  %v2188_v49 = vpack.c.bf16 %v1268_v36, %v1260_v35  ;;  %v2206_v16 = vpack.c.bf16 %v1287_v47, %v1279_v46 }
 0x166   :  { %2171 = vmatprep.subr.bf16.mxu1 %v2170_v53  ;;  %1356 = vmatprep.mubr.f32.mxu0 %v2418_v1  ;;  %v1284_v53 = vld [vmem:[#allocation10 + $0x1e0] sm:$0xff] }
 0x167   :  { %1427 = vmatprep.mubr.f32.mxu1 %v2418_v1  ;;  %v2192_v23 = vpack.c.bf16 %v1284_v53, %v1276_v52 }
 0x168   :  { %2157 = vmatpush1.bf16.msra.mxu0 %v2156_v57 }
 0x169   :  { %2173 = vmatpush1.bf16.msra.mxu1 %v2172_v58  ;;  %2159 = vmatprep.subr.bf16.mxu0 %v2158_v59 }
 0x16a   :  { %2175 = vmatprep.subr.bf16.mxu1 %v2174_v63 }
 0x16c   :  { %2161 = vmatpush1.bf16.msra.mxu0 %v2160_v39 }
 0x16d   :  { %2177 = vmatpush1.bf16.msra.mxu1 %v2176_v5  ;;  %2179 = vmatprep.subr.bf16.mxu0 %v2178_v6 }
 0x16e   :  { %2195 = vmatprep.subr.bf16.mxu1 %v2194_v32 }
 0x16f   :  { %1630 = vmatmul.mubr.msk.f32.vlgmr.msra.gmra.mrb[12].mxu0 %vm1288_vm0, %v2566_v17 }
 0x170   :  { %1631 = vmatmul.mubr.msk.f32.vlgmr.msra.gmra.mrb[12].mxu1 %vm1288_vm0, %v2566_v17  ;;  %2181 = vmatpush1.bf16.msra.mxu0 %v2180_v18 }
 0x171   :  { %2197 = vmatpush1.bf16.msra.mxu1 %v2196_v19  ;;  %2183 = vmatprep.subr.bf16.mxu0 %v2182_v20 }
 0x172   :  { %v413_v40 = vpop.f32.mrb[0].mxu0  ;;  %2199 = vmatprep.subr.bf16.mxu1 %v2198_v25  ;;  %1498 = vmatprep.mubr.f32.mxu0 %v2418_v1 }
 0x173   :  { %631 = vst [vmem:[#allocation11] sm:$0xff] %v413_v40  ;;  %v484_v15 = vpop.f32.mrb[0].mxu1  ;;  %v415_v45 = vpop.f32.mrb[1].mxu0  ;;  %1569 = vmatprep.mubr.f32.mxu1 %v2418_v1 }
 0x174   :  { %633 = vst [vmem:[#allocation11 + $0x10] sm:$0xff] %v484_v15  ;;  %632 = vst [vmem:[#allocation11 + $0x8] sm:$0xff] %v415_v45  ;;  %v486_v48 = vpop.f32.mrb[1].mxu1  ;;  %2185 = vmatpush1.bf16.msra.mxu0 %v2184_v31 }
 0x175   :  { %634 = vst [vmem:[#allocation11 + $0x18] sm:$0xff] %v486_v48  ;;  %2201 = vmatpush1.bf16.msra.mxu1 %v2200_v33  ;;  %2187 = vmatprep.subr.bf16.mxu0 %v2186_v34 }
 0x176   :  { %2203 = vmatprep.subr.bf16.mxu1 %v2202_v41 }
 0x178   :  { %2189 = vmatpush1.bf16.msra.mxu0 %v2188_v49 }
 0x179   :  { %2205 = vmatpush1.bf16.msra.mxu1 %v2204_v50  ;;  %2191 = vmatprep.subr.bf16.mxu0 %v2190_v51 }
 0x17a   :  { %2207 = vmatprep.subr.bf16.mxu1 %v2206_v16 }
 0x17c   :  { %2193 = vmatpush1.bf16.msra.mxu0 %v2192_v23 }
 0x17d   :  { %2209 = vmatpush1.bf16.msra.mxu1 %v2208_v56 }
 0x17f   :  { %1632 = vmatmul.mubr.msk.f32.vlgmr.msra.gmra.mrb[14].mxu0 %vm1288_vm0, %v2566_v17 }
 0x180   :  { %1633 = vmatmul.mubr.msk.f32.vlgmr.msra.gmra.mrb[14].mxu1 %vm1288_vm0, %v2566_v17 }
 0x1b2   :  { %v555_v57 = vpop.f32.mrb[2].mxu0 }
 0x1b3   :  { %635 = vst [vmem:[#allocation11 + $0x20] sm:$0xff] %v555_v57  ;;  %v626_v58 = vpop.f32.mrb[2].mxu1  ;;  %v557_v59 = vpop.f32.mrb[3].mxu0 }
 0x1b4   :  { %637 = vst [vmem:[#allocation11 + $0x30] sm:$0xff] %v626_v58  ;;  %636 = vst [vmem:[#allocation11 + $0x28] sm:$0xff] %v557_v59  ;;  %v628_v60 = vpop.f32.mrb[3].mxu1 }
 0x1b5   :  { %638 = vst [vmem:[#allocation11 + $0x38] sm:$0xff] %v628_v60 }
 0x1b6   :  { %2344 = shalt.err (!%p2341_p2)
}
 0x1b7   :  { %s2345_s19 = scalar_lea.hbm %s2622_s5, 1024 }
 0x1b8   :  { %p2346_p3 = scmp.ne.s32.totalorder %s2622_s5, %s2345_s19  ;;  %p2349_p4 = scmp.lt.u32.totalorder %s2345_s19, %s2622_s5 }
 0x1ba   :  { %p2351_p5 = pnand %p2349_p4, %p2346_p3 }
 0x1bc   :  { %2354 = shalt.err (!%p2351_p5)
}
 0x1bd   :  { %1593 = dma.vmem_to_hbm [thread:$0]  %s1591_s3, 1024, %s2622_s5, [#allocation4]  }
 0x1be   :  { %s2420_s5 = smov [#allocation12]  }
 0x1bf   :  { %s1599_s0 = sshll.u32 %s2420_s5, 4  ;;  %s1600_s0 = int_to_ptr.vmem [resolvable:$true] %s1599_s0 }
 0x1c0   :  { %s2355_s27 = scalar_lea.vmem %s1600_s0, 2048  ;;  %p2360_p7 = scmp.lt.s32.totalorder %s1600_s0, %s1600_s0 }
 0x1c1   :  { %p2356_p6 = scmp.ne.s32.totalorder %s1600_s0, %s2355_s27  ;;  %p2361_p8 = scmp.lt.s32.totalorder %s2355_s27, %s2355_s27 }
 0x1c3   :  { %p2362_p9 = por %p2361_p8, %p2360_p7 }
 0x1c5   :  { %p2363_p10 = pnand %p2362_p9, %p2356_p6 }
 0x1f2   :  { %v965_v61 = vpop.f32.mrb[4].mxu0 }
 0x1f3   :  { %1207 = vst [vmem:[#allocation12] sm:$0xff] %v965_v61  ;;  %v1042_v62 = vpop.f32.mrb[4].mxu1  ;;  %v967_v63 = vpop.f32.mrb[5].mxu0 }
 0x1f4   :  { %1209 = vst [vmem:[#allocation12 + $0x10] sm:$0xff] %v1042_v62  ;;  %1208 = vst [vmem:[#allocation12 + $0x8] sm:$0xff] %v967_v63  ;;  %v1044_v0 = vpop.f32.mrb[5].mxu1 }
 0x1f5   :  { %1210 = vst [vmem:[#allocation12 + $0x18] sm:$0xff] %v1044_v0 }
 0x1f6   :  { %v971_v1 = vpop.f32.mrb[6].mxu0 }
 0x1f7   :  { %1215 = vst [vmem:[#allocation12 + $0x40] sm:$0xff] %v971_v1  ;;  %v1048_v37 = vpop.f32.mrb[6].mxu1  ;;  %v973_v2 = vpop.f32.mrb[7].mxu0 }
 0x1f8   :  { %1217 = vst [vmem:[#allocation12 + $0x50] sm:$0xff] %v1048_v37  ;;  %1216 = vst [vmem:[#allocation12 + $0x48] sm:$0xff] %v973_v2  ;;  %v1050_v3 = vpop.f32.mrb[7].mxu1 }
 0x1f9   :  { %1218 = vst [vmem:[#allocation12 + $0x58] sm:$0xff] %v1050_v3 }
 0x232   :  { %v1119_v4 = vpop.f32.mrb[8].mxu0 }
 0x233   :  { %1211 = vst [vmem:[#allocation12 + $0x20] sm:$0xff] %v1119_v4  ;;  %v1196_v39 = vpop.f32.mrb[8].mxu1  ;;  %v1121_v5 = vpop.f32.mrb[9].mxu0 }
 0x234   :  { %1213 = vst [vmem:[#allocation12 + $0x30] sm:$0xff] %v1196_v39  ;;  %1212 = vst [vmem:[#allocation12 + $0x28] sm:$0xff] %v1121_v5  ;;  %v1198_v6 = vpop.f32.mrb[9].mxu1 }
 0x235   :  { %1214 = vst [vmem:[#allocation12 + $0x38] sm:$0xff] %v1198_v6 }
 0x236   :  { %v1125_v7 = vpop.f32.mrb[10].mxu0 }
 0x237   :  { %1219 = vst [vmem:[#allocation12 + $0x60] sm:$0xff] %v1125_v7  ;;  %v1202_v8 = vpop.f32.mrb[10].mxu1  ;;  %v1127_v9 = vpop.f32.mrb[11].mxu0 }
 0x238   :  { %1221 = vst [vmem:[#allocation12 + $0x70] sm:$0xff] %v1202_v8  ;;  %1220 = vst [vmem:[#allocation12 + $0x68] sm:$0xff] %v1127_v9  ;;  %v1204_v32 = vpop.f32.mrb[11].mxu1 }
 0x239   :  { %1222 = vst [vmem:[#allocation12 + $0x78] sm:$0xff] %v1204_v32 }
 0x23a   :  { %2366 = shalt.err (!%p2363_p10)
}
 0x23b   :  { %s2367_s30 = scalar_lea.hbm %s2623_s6, 2048 }
 0x23c   :  { %p2368_p11 = scmp.ne.s32.totalorder %s2623_s6, %s2367_s30  ;;  %p2371_p12 = scmp.lt.u32.totalorder %s2367_s30, %s2623_s6 }
 0x23e   :  { %p2373_p13 = pnand %p2371_p12, %p2368_p11 }
 0x240   :  { %2376 = shalt.err (!%p2373_p13)
}
 0x241   :  { %1605 = dma.vmem_to_hbm [thread:$0]  %s1600_s0, 2048, %s2623_s6, [#allocation13], %s2413_s1, %s2413_s1, %s2414_s25  }
 0x242   :  { %v1358_v10 = vpop.f32.mrb[12].mxu0  ;;  %s2421_s15 = smov [#allocation14]  }
 0x243   :  { %1576 = vst [vmem:[#allocation14] sm:$0xff] %v1358_v10  ;;  %v1429_v11 = vpop.f32.mrb[12].mxu1  ;;  %v1360_v12 = vpop.f32.mrb[13].mxu0  ;;  %s1612_s2 = sshll.u32 %s2421_s15, 4  ;;  %s1613_s2 = int_to_ptr.vmem [resolvable:$true] %s1612_s2 }
 0x244   :  { %1578 = vst [vmem:[#allocation14 + $0x10] sm:$0xff] %v1429_v11  ;;  %1577 = vst [vmem:[#allocation14 + $0x8] sm:$0xff] %v1360_v12  ;;  %v1431_v13 = vpop.f32.mrb[13].mxu1  ;;  %s2377_s6 = scalar_lea.vmem %s1613_s2, 1024  ;;  %p2382_p1 = scmp.lt.s32.totalorder %s1613_s2, %s1613_s2 }
 0x245   :  { %1579 = vst [vmem:[#allocation14 + $0x18] sm:$0xff] %v1431_v13  ;;  %p2378_p0 = scmp.ne.s32.totalorder %s1613_s2, %s2377_s6  ;;  %p2383_p2 = scmp.lt.s32.totalorder %s2377_s6, %s2377_s6 }
 0x247   :  { %p2384_p3 = por %p2383_p2, %p2382_p1 }
 0x249   :  { %p2385_p4 = pnand %p2384_p3, %p2378_p0 }
 0x252   :  { %v1500_v14 = vpop.f32.mrb[14].mxu0 }
 0x253   :  { %1580 = vst [vmem:[#allocation14 + $0x20] sm:$0xff] %v1500_v14  ;;  %v1571_v17 = vpop.f32.mrb[14].mxu1  ;;  %v1502_v18 = vpop.f32.mrb[15].mxu0 }
 0x254   :  { %1582 = vst [vmem:[#allocation14 + $0x30] sm:$0xff] %v1571_v17  ;;  %1581 = vst [vmem:[#allocation14 + $0x28] sm:$0xff] %v1502_v18  ;;  %v1573_v19 = vpop.f32.mrb[15].mxu1 }
 0x255   :  { %1583 = vst [vmem:[#allocation14 + $0x38] sm:$0xff] %v1573_v19 }
 0x256   :  { %2388 = shalt.err (!%p2385_p4)
}
 0x257   :  { %s2389_s8 = scalar_lea.hbm %s2624_s7, 1024 }
 0x258   :  { %p2390_p5 = scmp.ne.s32.totalorder %s2624_s7, %s2389_s8  ;;  %p2393_p6 = scmp.lt.u32.totalorder %s2389_s8, %s2624_s7 }
 0x25a   :  { %p2395_p7 = pnand %p2393_p6, %p2390_p5 }
 0x25c   :  { %2398 = shalt.err (!%p2395_p7)
}
 0x25d   :  { %1615 = dma.vmem_to_hbm [thread:$0]  %s1613_s2, 1024, %s2624_s7, [#allocation13]  }
 0x25e   :  { %2405 = dma.done.wait [#allocation4], 1024  }
 0x25f   :  { %2406 = vsyncadd [#allocation4], 4294966272 }
 0x260   :  { %2407 = dma.done.wait [#allocation13], 3072  }
 0x261   :  { %2408 = vsyncadd [#allocation13], 4294964224 }
 0x262   :  { %1625 = vsyncpa [#allocation3], 1 }
 0x263   :  { %1626 = vsyncpa [#allocation6], 1 }
 0x264   :  { %1627 = vsyncpa [#allocation9], 1 }
 0x265   :  { %1628 = vsyncpa [#allocation4], 1 }
 0x266   :  { %1629 = vsyncpa [#allocation13], 1 }

</bundles_post_ra>
